<compile_context>
chip_gen: v5e
topology: v5e:2x2
jax: 0.10.0
libtpu: 0.0.40
codegen_flags: <defaults>
</compile_context>

<pallas_src>
import functools

import jax
import jax.numpy as jnp
from jax.experimental import pallas as pl
from jax.experimental.pallas import tpu as pltpu

NCLASSES = 20
NCLASSES_PAD = 128        # classifier padded to a full lane tile; sliced to 20 outside
EXPANSION = 4
DROP_P = 0.2
BN_EPS = 1e-5
TN = 128                  # cout tile (v5e MXU width; gives more grid steps everywhere)
_NEG_FILL = -3.0e38       # ~bfloat16 lowest, stands in for the -inf maxpool padding


# ----------------------------------------------------------------------------
# Fused direct-convolution kernel: in-kernel zero padding, kw-concat contraction,
# folded-BN bias, optional residual + ReLU epilogue, flat lane/sublane-dense store.
# ----------------------------------------------------------------------------

def _conv_kernel(x_ref, w_ref, b_ref, *rest, kh, kw, stride, padding, relu,
                 ho, wo, has_res):
    rest = list(rest)
    r_ref = rest.pop(0) if has_res else None
    o_ref = rest.pop(0)
    xp_ref = rest.pop(0) if padding > 0 else None

    cin = x_ref.shape[-1]
    K = kw * cin

    if padding > 0:
        # Zero-fill the padded VMEM scratch and copy the interior: no padded copy of the
        # activation ever goes through HBM.
        xp_ref[...] = jnp.zeros_like(xp_ref)
        xp_ref[pl.ds(padding, x_ref.shape[0]),
               pl.ds(padding, x_ref.shape[1]), :] = x_ref[...]
        src = xp_ref
    else:
        src = x_ref

    if kh == 1 and kw == 1 and stride == 1:
        # Plain 1x1 conv: a single matmul over the whole block.
        acc = jnp.dot(src[...].reshape(ho * wo, cin), w_ref[0],
                      preferred_element_type=jnp.float32)
    else:
        # Gather the kw taps per dy and concatenate along channels -> contraction depth
        # K = kw*cin; only kh dots / accumulator passes (acc starts from the first dot).
        acc = None
        for dy in range(kh):
            cols = []
            for dx in range(kw):
                if stride == 1:
                    cols.append(src[pl.ds(dy, ho), pl.ds(dx, wo), :])
                else:
                    cols.append(src[pl.ds(dy, ho, stride=stride),
                                    pl.ds(dx, wo, stride=stride), :])
            a = cols[0] if kw == 1 else jnp.concatenate(cols, axis=-1)
            d = jnp.dot(a.reshape(ho * wo, K), w_ref[dy],
                        preferred_element_type=jnp.float32)
            acc = d if acc is None else acc + d

    acc = acc + b_ref[...]                                   # folded-BN bias (f32)
    if has_res:
        acc = acc + r_ref[...].astype(jnp.float32)
    if relu:
        acc = jnp.maximum(acc, 0.0)
    o_ref[...] = acc.astype(o_ref.dtype)                     # dense (ho*wo, tn) store


def conv2d(x, w, b, *, stride, padding, relu, residual=None):
    """x: [N,H,W,Cin] bf16 NHWC; w: [kh,kw,Cin,Cout] bf16 (BN folded); b: [Cout] f32.

    Optionally fuses `residual` (NHWC, same shape as the output) + ReLU into the epilogue.
    Returns NHWC bf16.
    """
    n, h, wd, cin = x.shape
    kh, kw, _, cout = w.shape
    ho = (h + 2 * padding - kh) // stride + 1
    wo = (wd + 2 * padding - kw) // stride + 1
    hp, wp = h + 2 * padding, wd + 2 * padding

    tn = cout if cout < TN else TN
    grid = (cout // tn, n)               # weights resident across the fast batch axis

    w2 = w.reshape(kh, kw * cin, cout)   # free contiguous reshape; rows ordered (dx, cin)
    b2 = b.reshape(1, cout)

    in_specs = [
        pl.BlockSpec((None, h, wd, cin), lambda j, i: (i, 0, 0, 0)),
        pl.BlockSpec((kh, kw * cin, tn), lambda j, i: (0, 0, j)),
        pl.BlockSpec((1, tn), lambda j, i: (0, j)),
    ]
    args = [x, w2, b2]
    if residual is not None:
        assert residual.shape == (n, ho, wo, cout), residual.shape
        in_specs.append(pl.BlockSpec((None, ho * wo, tn), lambda j, i: (i, 0, j)))
        args.append(residual.reshape(n, ho * wo, cout))

    scratch_shapes = []
    if padding > 0:
        scratch_shapes.append(pltpu.VMEM((hp, wp, cin), x.dtype))

    kernel = functools.partial(_conv_kernel, kh=kh, kw=kw, stride=stride,
                               padding=padding, relu=relu, ho=ho, wo=wo,
                               has_res=residual is not None)
    out = pl.pallas_call(
        kernel,
        out_shape=jax.ShapeDtypeStruct((n, ho * wo, cout), jnp.bfloat16),
        grid=grid,
        in_specs=in_specs,
        out_specs=pl.BlockSpec((None, ho * wo, tn), lambda j, i: (i, 0, j)),
        scratch_shapes=tuple(scratch_shapes),
        compiler_params=pltpu.CompilerParams(
            dimension_semantics=("parallel", "parallel")),
    )(*args)
    # Flat (n, ho*wo, cout) -> NHWC is a free contiguous reshape.
    return out.reshape(n, ho, wo, cout)


def conv1_7x7_s2(x, w, b):
    """Stem conv (7x7 / stride 2 / pad 3, cin=3): im2col in the wrapper (3 channels, so the
    padded/patch copies are negligible) -> one K=147 matmul in the kernel."""
    n, h, wd, cin = x.shape
    kh, kw, _, cout = w.shape
    stride, pad = 2, 3
    ho = (h + 2 * pad - kh) // stride + 1
    wo = (wd + 2 * pad - kw) // stride + 1
    xp = jnp.pad(x, ((0, 0), (pad, pad), (pad, pad), (0, 0)))
    cols = []
    for dy in range(kh):
        for dx in range(kw):
            cols.append(xp[:, dy:dy + (ho - 1) * stride + 1:stride,
                           dx:dx + (wo - 1) * stride + 1:stride, :])
    patches = jnp.concatenate(cols, axis=-1)              # (n, ho, wo, kh*kw*cin) bf16
    w2 = w.reshape(1, 1, kh * kw * cin, cout)
    return conv2d(patches, w2, b, stride=1, padding=0, relu=True)


# ----------------------------------------------------------------------------
# MaxPool2d(kernel=3, stride=2, padding=1) — in-kernel padding, two-stage window max
# ----------------------------------------------------------------------------

def _maxpool_kernel(x_ref, o_ref, xp_ref, wm_ref, *, ho, wo):
    h, w, _ = x_ref.shape
    xp_ref[...] = jnp.full_like(xp_ref, _NEG_FILL)
    xp_ref[pl.ds(1, h), pl.ds(1, w), :] = x_ref[...]
    # Stage 1: 3-wide window max along w (stride-2 subsampled) into a scratch.
    wm_ref[...] = jnp.maximum(
        jnp.maximum(xp_ref[:, pl.ds(0, wo, stride=2), :],
                    xp_ref[:, pl.ds(1, wo, stride=2), :]),
        xp_ref[:, pl.ds(2, wo, stride=2), :])
    # Stage 2: 3-wide window max along h (stride 2).
    o_ref[...] = jnp.maximum(
        jnp.maximum(wm_ref[pl.ds(0, ho, stride=2), :, :],
                    wm_ref[pl.ds(1, ho, stride=2), :, :]),
        wm_ref[pl.ds(2, ho, stride=2), :, :])


def maxpool_3x3_s2(x):
    n, h, w, c = x.shape
    ho = (h + 2 - 3) // 2 + 1
    wo = (w + 2 - 3) // 2 + 1
    return pl.pallas_call(
        functools.partial(_maxpool_kernel, ho=ho, wo=wo),
        out_shape=jax.ShapeDtypeStruct((n, ho, wo, c), x.dtype),
        grid=(n,),
        in_specs=[pl.BlockSpec((None, h, w, c), lambda i: (i, 0, 0, 0))],
        out_specs=pl.BlockSpec((None, ho, wo, c), lambda i: (i, 0, 0, 0)),
        scratch_shapes=(pltpu.VMEM((h + 2, w + 2, c), x.dtype),
                        pltpu.VMEM((h + 2, wo, c), x.dtype)),
        compiler_params=pltpu.CompilerParams(dimension_semantics=("parallel",)),
    )(x)


# ----------------------------------------------------------------------------
# Fused global-avg-pool + Dropout(0.2) + Linear(2048 -> 20), classifier padded to 128 lanes
# ----------------------------------------------------------------------------

def _head_kernel(x_ref, m_ref, w_ref, b_ref, o_ref):
    feats = jnp.mean(x_ref[...].astype(jnp.float32), axis=1)        # [N, C]  (GAP)
    drops = feats * m_ref[...]                                       # inverted dropout
    o_ref[...] = (jnp.dot(drops, w_ref[...], preferred_element_type=jnp.float32)
                  + b_ref[...])


def gap_dropout_fc(x, mask, w, b):
    n, h, wd, c = x.shape
    ncp = w.shape[1]
    x3 = x.reshape(n, h * wd, c)
    out = pl.pallas_call(
        _head_kernel,
        out_shape=jax.ShapeDtypeStruct((n, ncp), jnp.float32),
        grid=(1,),
        in_specs=[pl.BlockSpec((n, h * wd, c), lambda i: (0, 0, 0)),
                  pl.BlockSpec((n, c), lambda i: (0, 0)),
                  pl.BlockSpec((c, ncp), lambda i: (0, 0)),
                  pl.BlockSpec((1, ncp), lambda i: (0, 0))],
        out_specs=pl.BlockSpec((n, ncp), lambda i: (0, 0)),
    )(x3, mask, w, b.reshape(1, ncp))
    return out[:, :NCLASSES]                       # drop the lane padding


# ----------------------------------------------------------------------------
# Deterministic parameter init (synthetic — no checkpoint), BN folded into conv
# ----------------------------------------------------------------------------

def init_conv_bn(key, kh, kw, cin, cout):
    k1, k2, k3 = jax.random.split(key, 3)
    fan_in = kh * kw * cin
    w = jax.random.normal(k1, (kh, kw, cin, cout), jnp.float32) * jnp.sqrt(2.0 / fan_in)
    gamma = 1.0 + 0.1 * jax.random.normal(k2, (cout,), jnp.float32)
    beta = 0.05 * jax.random.normal(k3, (cout,), jnp.float32)
    running_mean = jnp.zeros((cout,), jnp.float32)
    running_var = jnp.ones((cout,), jnp.float32)
    scale = gamma / jnp.sqrt(running_var + BN_EPS)
    w_folded = (w * scale).astype(jnp.bfloat16)          # bf16 weights for the MXU
    b_folded = (beta - running_mean * scale).astype(jnp.float32)
    return w_folded, b_folded


def init_resnet50_params(key):
    params = {}
    keys = iter(jax.random.split(key, 128))
    params['conv1'] = init_conv_bn(next(keys), 7, 7, 3, 64)

    layers_cfg = [(64, 3, 1), (128, 4, 2), (256, 6, 2), (512, 3, 2)]
    cin = 64
    layers = []
    for width, nblocks, stride in layers_cfg:
        blocks = []
        for bi in range(nblocks):
            s = stride if bi == 0 else 1
            blk = {
                'conv1': init_conv_bn(next(keys), 1, 1, cin, width),
                'conv2': init_conv_bn(next(keys), 3, 3, width, width),
                'conv3': init_conv_bn(next(keys), 1, 1, width, width * EXPANSION),
                'stride': s,
            }
            if s != 1 or cin != width * EXPANSION:
                blk['down'] = init_conv_bn(next(keys), 1, 1, cin, width * EXPANSION)
            cin = width * EXPANSION
            blocks.append(blk)
        layers.append(blocks)
    params['layers'] = layers

    kf1, kf2 = jax.random.split(next(keys))
    fc_w = jax.random.normal(kf1, (512 * EXPANSION, NCLASSES),
                             jnp.float32) / jnp.sqrt(512.0 * EXPANSION)
    fc_b = 0.01 * jax.random.normal(kf2, (NCLASSES,), jnp.float32)
    # Pad classifier to a full 128-lane tile; logits are sliced back to 20 outside.
    params['fc_w'] = jnp.zeros((512 * EXPANSION, NCLASSES_PAD),
                               jnp.float32).at[:, :NCLASSES].set(fc_w)
    params['fc_b'] = jnp.zeros((NCLASSES_PAD,), jnp.float32).at[:NCLASSES].set(fc_b)
    return params


# ----------------------------------------------------------------------------
# Forward pass
# ----------------------------------------------------------------------------

def bottleneck(x, blk):
    stride = blk['stride']
    if 'down' in blk:
        identity = conv2d(x, *blk['down'], stride=stride, padding=0, relu=False)
    else:
        identity = x
    out = conv2d(x, *blk['conv1'], stride=1, padding=0, relu=True)
    out = conv2d(out, *blk['conv2'], stride=stride, padding=1, relu=True)
    # conv3 + folded-BN bias + residual add + ReLU fused into one kernel epilogue.
    out = conv2d(out, *blk['conv3'], stride=1, padding=0, relu=True, residual=identity)
    return out


def net_forward(params, x_nchw, *, rng=None, training=True):
    # PyTorch NCHW input -> NHWC bf16 for the kernels.
    x = jnp.transpose(x_nchw, (0, 2, 3, 1)).astype(jnp.bfloat16)
    x = conv1_7x7_s2(x, *params['conv1'])                             # conv1 + BN + ReLU
    x = maxpool_3x3_s2(x)                                             # maxpool 3x3/s2/p1
    for blocks in params['layers']:                                   # layer1..layer4
        for blk in blocks:
            x = bottleneck(x, blk)
    n = x.shape[0]
    c = 512 * EXPANSION
    if training:
        # Dropout mask resampled per call from the provided key (matches nn.Dropout).
        keep = jax.random.bernoulli(rng, 1.0 - DROP_P, (n, c)).astype(jnp.float32)
        mask = keep * (1.0 / (1.0 - DROP_P))
    else:
        mask = jnp.ones((n, c), jnp.float32)
    # featurizer.fc is Identity(); fused avgpool -> dropout -> classifier:
    return gap_dropout_fc(x, mask, params['fc_w'], params['fc_b'])


if __name__ == "__main__":
    key = jax.random.PRNGKey(0)
    pkey, xkey, dkey = jax.random.split(key, 3)
    params = init_resnet50_params(pkey)
    # Small-but-valid ResNet-50 input: batch=2, 3 channels, 64x64 spatial (NCHW).
    x = jax.random.normal(xkey, (2, 3, 64, 64), jnp.float32)
    logits = net_forward(params, x, rng=dkey, training=True)
    logits = jax.block_until_ready(logits)
    assert logits.shape == (2, NCLASSES), logits.shape
    print("KERNEL_OK")
</pallas_src>

<mosaic_0001>
module attributes {stable_mosaic.version = 11 : i64} {
  func.func @_conv_kernel(%arg0: i32, %arg1: i32, %arg2: memref<1x32x32x147xbf16, #tpu.memory_space<vmem>>, %arg3: memref<1x147x64xbf16, #tpu.memory_space<vmem>>, %arg4: memref<1x64xf32, #tpu.memory_space<vmem>>, %arg5: memref<1x1024x64xbf16, #tpu.memory_space<vmem>>) attributes {dimension_semantics = [#tpu.dimension_semantics<parallel>, #tpu.dimension_semantics<parallel>], iteration_bounds = array<i64: 1, 2>, scalar_prefetch = 0 : i64, scratch_operands = 0 : i64, tpu.core_type = #tpu.core_type<tc>, window_params = [{transform_indices = @transform_0, window_bounds = array<i64: 1, 32, 32, 147>}, {transform_indices = @transform_1, window_bounds = array<i64: 1, 147, 64>}, {transform_indices = @transform_2, window_bounds = array<i64: 1, 64>}, {transform_indices = @transform_3, window_bounds = array<i64: 1, 1024, 64>}]} {
    %c0 = arith.constant 0 : index
    %c0_0 = arith.constant 0 : index
    %c0_1 = arith.constant 0 : index
    %c0_2 = arith.constant 0 : index
    %0 = vector.load %arg2[%c0, %c0_0, %c0_1, %c0_2] : memref<1x32x32x147xbf16, #tpu.memory_space<vmem>>, vector<1x32x32x147xbf16>
    %1 = vector.shape_cast %0 : vector<1x32x32x147xbf16> to vector<32x32x147xbf16>
    %2 = vector.shape_cast %1 : vector<32x32x147xbf16> to vector<1024x147xbf16>
    %c0_3 = arith.constant 0 : index
    %c0_4 = arith.constant 0 : index
    %c0_5 = arith.constant 0 : index
    %3 = vector.load %arg3[%c0_3, %c0_4, %c0_5] : memref<1x147x64xbf16, #tpu.memory_space<vmem>>, vector<1x147x64xbf16>
    %4 = vector.shape_cast %3 : vector<1x147x64xbf16> to vector<147x64xbf16>
    %cst = arith.constant dense<0.000000e+00> : vector<1024x64xf32>
    %5 = tpu.matmul %2, %4, %cst {dimension_numbers = #tpu.dot_dimension_numbers<[1], [0], [0], [1], [0, 0, 1, 1], [], []>} : vector<1024x147xbf16>, vector<147x64xbf16>, vector<1024x64xf32> -> vector<1024x64xf32>
    %c0_6 = arith.constant 0 : index
    %c0_7 = arith.constant 0 : index
    %6 = vector.load %arg4[%c0_6, %c0_7] : memref<1x64xf32, #tpu.memory_space<vmem>>, vector<1x64xf32>
    %7 = vector.broadcast %6 : vector<1x64xf32> to vector<1024x64xf32>
    %8 = arith.addf %5, %7 : vector<1024x64xf32>
    %cst_8 = arith.constant 0.000000e+00 : f32
    %9 = vector.broadcast %cst_8 : f32 to vector<1024x64xf32>
    %10 = arith.maximumf %8, %9 : vector<1024x64xf32>
    %11 = arith.truncf %10 : vector<1024x64xf32> to vector<1024x64xbf16>
    %c0_9 = arith.constant 0 : index
    %c0_10 = arith.constant 0 : index
    %c0_11 = arith.constant 0 : index
    %12 = vector.load %arg5[%c0_9, %c0_10, %c0_11] : memref<1x1024x64xbf16, #tpu.memory_space<vmem>>, vector<1x1024x64xbf16>
    %13 = vector.shape_cast %12 : vector<1x1024x64xbf16> to vector<1024x64xbf16>
    %14 = vector.shape_cast %11 : vector<1024x64xbf16> to vector<1x1024x64xbf16>
    tpu.vector_store %arg5[%c0_9, %c0_10, %c0_11], %14 {strides = array<i32>} : memref<1x1024x64xbf16, #tpu.memory_space<vmem>>, vector<1x1024x64xbf16>,
    return
  }
  func.func @transform_0(%arg0: i32, %arg1: i32) -> (i32, i32, i32, i32) {
    %c0_i32 = arith.constant 0 : i32
    %c0_i32_0 = arith.constant 0 : i32
    %c0_i32_1 = arith.constant 0 : i32
    %c0_i32_2 = arith.constant 0 : i32
    return %arg1, %c0_i32, %c0_i32_0, %c0_i32_1 : i32, i32, i32, i32
  }
  func.func @transform_1(%arg0: i32, %arg1: i32) -> (i32, i32, i32) {
    %c0_i32 = arith.constant 0 : i32
    %c0_i32_0 = arith.constant 0 : i32
    %c0_i32_1 = arith.constant 0 : i32
    return %c0_i32, %c0_i32_0, %arg0 : i32, i32, i32
  }
  func.func @transform_2(%arg0: i32, %arg1: i32) -> (i32, i32) {
    %c0_i32 = arith.constant 0 : i32
    %c0_i32_0 = arith.constant 0 : i32
    return %c0_i32, %arg0 : i32, i32
  }
  func.func @transform_3(%arg0: i32, %arg1: i32) -> (i32, i32, i32) {
    %c0_i32 = arith.constant 0 : i32
    %c0_i32_0 = arith.constant 0 : i32
    return %arg1, %c0_i32, %arg0 : i32, i32, i32
  }
}

</mosaic_0001>

<bundles_post_ra>
// kernel: tpu_custom_call.1
= control target key start
LH: loop header
LB: loop body
LE: loop exit
PB: predicated region body
PF: predicated region fallthrough
CT: control target
= control target key end

     0   :  { %8 = vsyncpa [#allocation3], 0  ;;  %s4318_s0 = inlined_call_operand.hbm [shape: bf16[2,32,32,147], index: 0, kind: input, shape index: {}]   ;;  %s4319_s1 = inlined_call_operand.vmem [shape: bf16[1,147,64], index: 1, kind: input, shape index: {}]   ;;  %s4320_s2 = inlined_call_operand.vmem [shape: f32[1,64], index: 2, kind: input, shape index: {}]   ;;  %s4321_s3 = inlined_call_operand.vmem [shape: bf16[2,1024,64], index: 3, kind: output, shape index: {}]  }
   0x1   :  { %10 = vsyncpa [#allocation3 + $0x1], 0  ;;  %s3330_s12 = smov 0   ;;  %s3332_s13 = smov 0  }
   0x2   :  { %s3334_s14 = smov 0   ;;  %s3336_s15 = smov 0  }
   0x3   :  { %s3338_s16 = smov 0   ;;  %s3340_s17 = smov 0  }
   0x4 LB: > { %s2388_s18 = sadd.s32 4294967295, %s3305_s17   ;;  %s25_s19 = sadd.s32 1, %s3301_s16  ;;  %s3305_s17 = sphi %s3340_s17, %s16_s17   ;;  %s3301_s16 = sphi %s3338_s16, %s4328_s16   ;;  %s3297_s15 = sphi %s3336_s15, %s4327_s15   ;;  %s3293_s14 = sphi %s3334_s14, %s4326_s14   ;;  %s3289_s13 = sphi %s3332_s13, %s4325_s13   ;;  %s3285_s12 = sphi %s3330_s12, %s4324_s12  }
   0x5   : > { %p26_p0 = scmp.ge.s32.totalorder %s25_s19, 2  ;;  %s35_s20 = sadd.s32 1, %s3293_s14 }
   0x6   : > { %p42_p1 = scmp.ne.s32.totalorder %s3293_s14, %s3289_s13  ;;  %p43_p2 = scmp.eq.s32.totalorder %s3305_s17, 0 }
   0x7   : > { %s4330_s19 = smov (%p26_p0, %s25_s19), 0  ;;  %p48_p4 = scmp.ne.s32.totalorder %s3289_s13, %s3285_s12 }
   0x8   : > { %p3366_p3 = por %p43_p2, %p42_p1  ;;  %s32_s22 = ssub.s32 %s3301_s16, %s4330_s19 }
   0x9   : > { %p49_p5 = scmp.eq.s32.totalorder %s2388_s18, 0  ;;  %p33_p6 = scmp.eq.s32.totalorder %s32_s22, 0 }
   0xa   : > { %p3170_p8 = scmp.lt.s32.totalorder %s3305_s17, 2  ;;  %s165_s25 = sand.u32 1, %s3293_s14  }
   0xb   : > { %p3373_p7 = por %p49_p5, %p48_p4  ;;  %s3015_s26 = sshll.u32 %s3301_s16, 10 }
   0xc   : > { %s3379_s24 = scalar_select %p33_p6, %s3293_s14, %s35_s20  }
   0xd   : > { %s2394_s27 = sshll.u32 %s165_s25, 10  ;;  %s174_s30 = scalar_lea.hbm %s4318_s0, %s3015_s26 }
   0xe   : > { %s175_s4 = sshll.u32 %s174_s30, 4  ;;  %s169_s5 = scalar_lea.vmem [#allocation2], %s2394_s27  ;;  %s176_s4 = int_to_ptr.hbm [resolvable:$true] %s175_s4 }
   0xf   : > { %s177_s6 = sshll.u32 %s169_s5, 4  ;;  %p3167_p9 = pnand %p3170_p8, %p3366_p3  ;;  %s178_s6 = int_to_ptr.vmem [resolvable:$true] %s177_s6 }
  0x10   : > { %p2397_p10 = scmp.ge.s32.totalorder %s3305_s17, 1  ;;  %p185_p11 = scmp.lt.s32.totalorder %s3305_s17, 3 }
  0x11   : > { %s166_s7 = scalar_lea.sflag [#allocation3], %s165_s25  ;;  %s3307_s8 = smov 128  }
  0x12   : > { %s3308_s9 = smov 8   ;;  %p186_p12 = pnand %p2397_p10, %p185_p11 }
  0x13   : > { %3169 = dma.hbm_to_vmem [thread:$0]  (!%p3167_p9), %s176_s4, 16384, %s178_s6, %s166_s7, %s3307_s8, %s3307_s8, %s3308_s9  }
  0x14   : > { %189 = sbr.rel (%p186_p12) target bundleno = 703 (0x2bf), region = 32  ;;  %s191_s10 = sand.u32 (!%p186_p12), 1, %s3289_s13  }
  0x15   : > { %s2398_s11 = sshll.u32 (!%p186_p12), %s191_s10, 10  ;;  %s192_s12 = scalar_lea.sflag (!%p186_p12), [#allocation3], %s191_s10 }
  0x16   : > { %s3391_s18 = scalar_lea.vmem (!%p186_p12), [#allocation2], %s2398_s11 }
  0x19   : > { %3280 = dma.done.wait (%p3373_p7), %s192_s12, 16384  }
  0x1a   : > { %3282 = vsyncadd (%p3373_p7), %s192_s12, 4294950912  ;;  %vm1222_vm0 = vcmask 1040384   ;;  %vm1223_vm1 = vcmask 1041408   ;;  %v3309_v0 = vmov 65535   ;;  %v3152_v2 = vld [vmem:[%s4319_s1 + $0x38] sm:$0xff]  ;;  %v3151_v5 = vld [vmem:[%s4319_s1 + $0x30] sm:$0xff] }
  0x1b   : > { %v1224_v1 = vsel %vm1222_vm0, 4294967295, %v3309_v0  ;;  %v391_v3 = vld [vmem:[%s4319_s1 + $0x48] sm:$0x3]  ;;  %1229 = vmatpush.bf16.msra.mxu0 %v3152_v2  ;;  %3154 = vmatpush.bf16.msra.mxu2 %v3152_v2  ;;  %v3153_v10 = vld [vmem:[%s4319_s1 + $0x40] sm:$0xff]  ;;  %v2405_v12 = vld [vmem:[%s3391_s18 + $0x8] sm:$0xf0] }
  0x1c   : > { %v1009_v4 = vunpack.c.l.b16 %v391_v3  ;;  %v1225_v6 = vsel %vm1223_vm1, %v1224_v1, 0  ;;  %v3150_v9 = vld [vmem:[%s4319_s1 + $0x28] sm:$0xff]  ;;  %v3017_v11 = vld [vmem:[%s3391_s18 + $0x4] sm:$0xf]  ;;  %v3083_v13 = vld [vmem:[%s3391_s18 + $0x214] sm:$0xf] }
  0x1d   : > { %v2669_v14 = vld [vmem:[%s3391_s18 + $0x218] sm:$0xf0]  ;;  %v2408_v15 = vor.u32 %v3017_v11, %v2405_v12  ;;  %v3149_v16 = vld [vmem:[%s4319_s1 + $0x20] sm:$0xff]  ;;  %vm1029_vm2 = vcmask 154624   ;;  %v3147_v19 = vld [vmem:[%s4319_s1 + $0x10] sm:$0xff]  ;;  %p236_p13 = scmp.lt.s32.totalorder %s3297_s15, 1 }
  0x1e   : > { %v1019_v7 = vpack.c.b16 %v1009_v4, %v1009_v4  ;;  %v2672_v17 = vor.u32 %v3083_v13, %v2669_v14  ;;  %v3148_v18 = vld [vmem:[%s4319_s1 + $0x18] sm:$0xff]  ;;  %v3146_v20 = vld [vmem:[%s4319_s1 + $0x8] sm:$0xff]  ;;  %v3019_v21 = vld [vmem:[%s3391_s18 + $0x14] sm:$0xf]  ;;  %vm2143_vm3 = vcmask 519168  }
  0x1f   : > { %1230 = vmatpush.bf16.msra.mxu0 %v3151_v5  ;;  %3155 = vmatpush.bf16.msra.mxu2 %v3151_v5  ;;  %v2413_v22 = vld [vmem:[%s3391_s18 + $0x18] sm:$0xf0]  ;;  %v3085_v23 = vld [vmem:[%s3391_s18 + $0x224] sm:$0xf]  ;;  %v2677_v24 = vld [vmem:[%s3391_s18 + $0x228] sm:$0xf0] }
  0x20   : > { %v1227_v8 = vand.u32 %v1225_v6, %v1019_v7  ;;  %v2416_v25 = vor.u32 %v3019_v21, %v2413_v22  ;;  %v3145_v26 = vld [vmem:[%s4319_s1] sm:$0xff]  ;;  %v3018_v28 = vld [vmem:[%s3391_s18 + $0x4] sm:$0xf0]  ;;  %v2680_v31 = vor.u32 %v3085_v23, %v2677_v24  ;;  %v2421_v35 = vld [vmem:[%s3391_s18 + $0x28] sm:$0xf0]  ;;  %s4332_s15 = smov (!%p236_p13, %s3297_s15), 1 }
  0x21   : > { %v2403_v27 = vld [vmem:[%s3391_s18] sm:$0xf]  ;;  %v3082_v30 = vld [vmem:[%s3391_s18 + $0x204] sm:$0xf0]  ;;  %v3021_v34 = vld [vmem:[%s3391_s18 + $0x24] sm:$0xf] }
  0x22   : > { %1564 = vmatpush.bf16.msra.mxu1 %v1227_v8  ;;  %3162 = vmatpush.bf16.msra.mxu3 %v1227_v8  ;;  %v2659_v29 = vld [vmem:[%s3391_s18 + $0x200] sm:$0xf]  ;;  %v2404_v32 = vor.u32 %v3018_v28, %v2403_v27  ;;  %v3087_v36 = vld [vmem:[%s3391_s18 + $0x234] sm:$0xf]  ;;  %v2685_v37 = vld [vmem:[%s3391_s18 + $0x238] sm:$0xf0]  ;;  %v2424_v38 = vor.u32 %v3021_v34, %v2421_v35 }
  0x23   : > { %1231 = vmatpush.bf16.msra.mxu0 %v3150_v9  ;;  %3156 = vmatpush.bf16.msra.mxu2 %v3150_v9  ;;  %v2660_v33 = vor.u32 %v3082_v30, %v2659_v29  ;;  %v2411_v39 = vld [vmem:[%s3391_s18 + $0x10] sm:$0xf]  ;;  %v3020_v40 = vld [vmem:[%s3391_s18 + $0x14] sm:$0xf0]  ;;  %v2688_v43 = vor.u32 %v3087_v36, %v2685_v37  ;;  %v3023_v46 = vld [vmem:[%s3391_s18 + $0x34] sm:$0xf] }
  0x24   : > { %v2667_v41 = vld [vmem:[%s3391_s18 + $0x210] sm:$0xf]  ;;  %v3084_v42 = vld [vmem:[%s3391_s18 + $0x214] sm:$0xf0]  ;;  %v2412_v44 = vor.u32 %v3020_v40, %v2411_v39  ;;  %v2429_v47 = vld [vmem:[%s3391_s18 + $0x38] sm:$0xf0] }
  0x25   : > { %v2668_v45 = vor.u32 %v3084_v42, %v2667_v41  ;;  %v3089_v48 = vld [vmem:[%s3391_s18 + $0x244] sm:$0xf]  ;;  %v2693_v49 = vld [vmem:[%s3391_s18 + $0x248] sm:$0xf0]  ;;  %v2432_v50 = vor.u32 %v3023_v46, %v2429_v47  ;;  %v2419_v51 = vld [vmem:[%s3391_s18 + $0x20] sm:$0xf] }
  0x26   : > { %1565 = vmatpush.bf16.msra.mxu1 %v3153_v10  ;;  %3163 = vmatpush.bf16.msra.mxu3 %v3153_v10  ;;  %v3022_v52 = vld [vmem:[%s3391_s18 + $0x24] sm:$0xf0]  ;;  %v2675_v53 = vld [vmem:[%s3391_s18 + $0x220] sm:$0xf]  ;;  %v2696_v55 = vor.u32 %v3089_v48, %v2693_v49  ;;  %v3025_v58 = vld [vmem:[%s3391_s18 + $0x44] sm:$0xf] }
  0x27   : > { %1232 = vmatpush.bf16.msra.mxu0 %v3149_v16  ;;  %3157 = vmatpush.bf16.msra.mxu2 %v3149_v16  ;;  %v3086_v54 = vld [vmem:[%s3391_s18 + $0x224] sm:$0xf0]  ;;  %v2420_v56 = vor.u32 %v3022_v52, %v2419_v51  ;;  %v2437_v59 = vld [vmem:[%s3391_s18 + $0x48] sm:$0xf0]  ;;  %v3091_v60 = vld [vmem:[%s3391_s18 + $0x254] sm:$0xf] }
  0x28   : > { %v2676_v57 = vor.u32 %v3086_v54, %v2675_v53  ;;  %v2701_v61 = vld [vmem:[%s3391_s18 + $0x258] sm:$0xf0]  ;;  %v2440_v62 = vor.u32 %v3025_v58, %v2437_v59  ;;  %v2427_v63 = vld [vmem:[%s3391_s18 + $0x30] sm:$0xf]  ;;  %v3024_v0 = vld [vmem:[%s3391_s18 + $0x34] sm:$0xf0] }
  0x29   : > { %2949 = vmatmul.msk.bf16.vlgmr.msra.gmra.mxu1 %vm1029_vm2, %v2408_v15  ;;  %2982 = vmatmul.msk.bf16.vlgmr.msra.gmra.mxu3 %vm1029_vm2, %v2672_v17  ;;  %v2683_v1 = vld [vmem:[%s3391_s18 + $0x230] sm:$0xf]  ;;  %v3088_v2 = vld [vmem:[%s3391_s18 + $0x234] sm:$0xf0]  ;;  %v2704_v3 = vor.u32 %v3091_v60, %v2701_v61  ;;  %v2428_v4 = vor.u32 %v3024_v0, %v2427_v63  ;;  %v3027_v6 = vld [vmem:[%s3391_s18 + $0x54] sm:$0xf] }
  0x2a   : > { %v2684_v5 = vor.u32 %v3088_v2, %v2683_v1  ;;  %v2445_v7 = vld [vmem:[%s3391_s18 + $0x58] sm:$0xf0]  ;;  %v3093_v8 = vld [vmem:[%s3391_s18 + $0x264] sm:$0xf]  ;;  %v2709_v9 = vld [vmem:[%s3391_s18 + $0x268] sm:$0xf0] }
  0x2b   : > { %1233 = vmatpush.bf16.msra.mxu0 %v3148_v18  ;;  %3158 = vmatpush.bf16.msra.mxu2 %v3148_v18  ;;  %v2448_v10 = vor.u32 %v3027_v6, %v2445_v7  ;;  %v2435_v11 = vld [vmem:[%s3391_s18 + $0x40] sm:$0xf]  ;;  %v3026_v12 = vld [vmem:[%s3391_s18 + $0x44] sm:$0xf0]  ;;  %v2712_v15 = vor.u32 %v3093_v8, %v2709_v9  ;;  %v3029_v18 = vld [vmem:[%s3391_s18 + $0x64] sm:$0xf] }
  0x2c   : > { %v2691_v13 = vld [vmem:[%s3391_s18 + $0x240] sm:$0xf]  ;;  %v3090_v14 = vld [vmem:[%s3391_s18 + $0x244] sm:$0xf0]  ;;  %v2436_v16 = vor.u32 %v3026_v12, %v2435_v11  ;;  %v2717_v21 = vld [vmem:[%s3391_s18 + $0x278] sm:$0xf0] }
  0x2d   : > { %v2692_v17 = vor.u32 %v3090_v14, %v2691_v13  ;;  %v2443_v23 = vld [vmem:[%s3391_s18 + $0x50] sm:$0xf]  ;;  %v3028_v24 = vld [vmem:[%s3391_s18 + $0x54] sm:$0xf0]  ;;  %v3031_v30 = vld [vmem:[%s3391_s18 + $0x74] sm:$0xf] }
  0x2e   : > { %v2444_v28 = vor.u32 %v3028_v24, %v2443_v23  ;;  %v2451_v35 = vld [vmem:[%s3391_s18 + $0x60] sm:$0xf]  ;;  %v3030_v36 = vld [vmem:[%s3391_s18 + $0x64] sm:$0xf0]  ;;  %v3033_v42 = vld [vmem:[%s3391_s18 + $0x84] sm:$0xf] }
  0x2f   : > { %1234 = vmatpush.bf16.msra.mxu0 %v3147_v19  ;;  %3159 = vmatpush.bf16.msra.mxu2 %v3147_v19  ;;  %v2453_v19 = vld [vmem:[%s3391_s18 + $0x68] sm:$0xf0]  ;;  %v2707_v37 = vld [vmem:[%s3391_s18 + $0x260] sm:$0xf]  ;;  %v2452_v40 = vor.u32 %v3030_v36, %v2451_v35  ;;  %v2459_v47 = vld [vmem:[%s3391_s18 + $0x70] sm:$0xf] }
  0x30   : > { %v2456_v22 = vor.u32 %v3029_v18, %v2453_v19  ;;  %v3032_v48 = vld [vmem:[%s3391_s18 + $0x74] sm:$0xf0]  ;;  %v2477_v58 = vld [vmem:[%s3391_s18 + $0x98] sm:$0xf0]  ;;  %v3101_v59 = vld [vmem:[%s3391_s18 + $0x2a4] sm:$0xf] }
  0x31   : > { %v3096_v51 = vld [vmem:[%s3391_s18 + $0x274] sm:$0xf0]  ;;  %v2460_v53 = vor.u32 %v3032_v48, %v2459_v47  ;;  %v2741_v60 = vld [vmem:[%s3391_s18 + $0x2a8] sm:$0xf0]  ;;  %v3034_v63 = vld [vmem:[%s3391_s18 + $0x84] sm:$0xf0] }
  0x32   : > { %v3527_v2 = vld [vmem:[%s4320_s2] ss:$0 sm:$0xff]  ;;  %s3016_s25 = sshll.u32 %s4332_s15, 9  ;;  %v3037_v18 = vld [vmem:[%s3391_s18 + $0xa4] sm:$0xf] }
  0x33   : > { %1235 = vmatpush.bf16.msra.mxu0 %v3146_v20  ;;  %3160 = vmatpush.bf16.msra.mxu2 %v3146_v20  ;;  %v3095_v20 = vld [vmem:[%s3391_s18 + $0x274] sm:$0xf]  ;;  %s3540_s27 = scalar_lea.vmem %s4321_s3, %s3016_s25  ;;  %v2485_v19 = vld [vmem:[%s3391_s18 + $0xa8] sm:$0xf0]  ;;  %v2475_v24 = vld [vmem:[%s3391_s18 + $0x90] sm:$0xf] }
  0x34   : > { %v2720_v27 = vor.u32 %v3095_v20, %v2717_v21  ;;  %v3103_v21 = vld [vmem:[%s3391_s18 + $0x2b4] sm:$0xf]  ;;  %v2488_v23 = vor.u32 %v3037_v18, %v2485_v19  ;;  %v2493_v48 = vld [vmem:[%s3391_s18 + $0xb8] sm:$0xf0] }
  0x35   : > { %v3039_v47 = vld [vmem:[%s3391_s18 + $0xb4] sm:$0xf] }
  0x37   : > { %1236 = vmatpush.bf16.msra.mxu0 %v3145_v26  ;;  %3161 = vmatpush.bf16.msra.mxu2 %v3145_v26  ;;  %v3092_v26 = vld [vmem:[%s3391_s18 + $0x254] sm:$0xf0] }
  0x39   : > { %2950 = vmatmul.msk.bf16.gmra.mxu1 %vm1029_vm2, %v2416_v25  ;;  %2983 = vmatmul.msk.bf16.gmra.mxu3 %vm1029_vm2, %v2680_v31  ;;  %v2699_v25 = vld [vmem:[%s3391_s18 + $0x250] sm:$0xf]  ;;  %v2461_v31 = vld [vmem:[%s3391_s18 + $0x78] sm:$0xf0] }
  0x3a   : > { %1237 = vmatmul.bf16.vlgmr.msra.gmra.mxu0 %v2404_v32  ;;  %1397 = vmatmul.bf16.vlgmr.msra.gmra.mxu2 %v2660_v33  ;;  %v2700_v29 = vor.u32 %v3092_v26, %v2699_v25  ;;  %v3097_v32 = vld [vmem:[%s3391_s18 + $0x284] sm:$0xf]  ;;  %v2725_v33 = vld [vmem:[%s3391_s18 + $0x288] sm:$0xf0]  ;;  %v2464_v34 = vor.u32 %v3031_v30, %v2461_v31  ;;  %v3036_v25 = vld [vmem:[%s3391_s18 + $0x94] sm:$0xf0] }
  0x3b   : > { %v2728_v39 = vor.u32 %v3097_v32, %v2725_v33  ;;  %v3100_v30 = vld [vmem:[%s3391_s18 + $0x294] sm:$0xf0] }
  0x49   : > { %2951 = vmatmul.msk.bf16.gmra.mxu1 %vm1029_vm2, %v2424_v38  ;;  %2984 = vmatmul.msk.bf16.gmra.mxu3 %vm1029_vm2, %v2688_v43  ;;  %v3094_v38 = vld [vmem:[%s3391_s18 + $0x264] sm:$0xf0]  ;;  %v2469_v43 = vld [vmem:[%s3391_s18 + $0x88] sm:$0xf0] }
  0x4a   : > { %1242 = vmatmul.bf16.gmra.mxu0 %v2412_v44  ;;  %1402 = vmatmul.bf16.gmra.mxu2 %v2668_v45  ;;  %v2708_v41 = vor.u32 %v3094_v38, %v2707_v37  ;;  %v3099_v44 = vld [vmem:[%s3391_s18 + $0x294] sm:$0xf]  ;;  %v2733_v45 = vld [vmem:[%s3391_s18 + $0x298] sm:$0xf0]  ;;  %v2472_v46 = vor.u32 %v3033_v42, %v2469_v43 }
  0x4b   : > { %v2736_v52 = vor.u32 %v3099_v44, %v2733_v45 }
  0x59   : > { %2952 = vmatmul.msk.bf16.gmra.mxu1 %vm1029_vm2, %v2432_v50  ;;  %2985 = vmatmul.msk.bf16.gmra.mxu3 %vm1029_vm2, %v2696_v55  ;;  %v2715_v50 = vld [vmem:[%s3391_s18 + $0x270] sm:$0xf] }
  0x5a   : > { %1247 = vmatmul.bf16.gmra.mxu0 %v2420_v56  ;;  %1407 = vmatmul.bf16.gmra.mxu2 %v2676_v57  ;;  %v2716_v54 = vor.u32 %v3096_v51, %v2715_v50  ;;  %v3035_v57 = vld [vmem:[%s3391_s18 + $0x94] sm:$0xf]  ;;  %v3105_v51 = vld [vmem:[%s3391_s18 + $0x2c4] sm:$0xf] }
  0x5b   : > { %v2480_v61 = vor.u32 %v3035_v57, %v2477_v58  ;;  %v3038_v57 = vld [vmem:[%s3391_s18 + $0xa4] sm:$0xf0] }
  0x69   : > { %2953 = vmatmul.msk.bf16.gmra.mxu1 %vm1029_vm2, %v2440_v62  ;;  %2986 = vmatmul.msk.bf16.gmra.mxu3 %vm1029_vm2, %v2704_v3  ;;  %v2467_v62 = vld [vmem:[%s3391_s18 + $0x80] sm:$0xf] }
  0x6a   : > { %1252 = vmatmul.bf16.gmra.mxu0 %v2428_v4  ;;  %1412 = vmatmul.bf16.gmra.mxu2 %v2684_v5  ;;  %v2723_v3 = vld [vmem:[%s3391_s18 + $0x280] sm:$0xf]  ;;  %v3098_v4 = vld [vmem:[%s3391_s18 + $0x284] sm:$0xf0]  ;;  %v2744_v5 = vor.u32 %v3101_v59, %v2741_v60  ;;  %v2468_v6 = vor.u32 %v3034_v63, %v2467_v62 }
  0x6b   : > { %v2724_v8 = vor.u32 %v3098_v4, %v2723_v3  ;;  %v3102_v62 = vld [vmem:[%s3391_s18 + $0x2a4] sm:$0xf0] }
  0x79   : > { %2954 = vmatmul.msk.bf16.gmra.mxu1 %vm1029_vm2, %v2448_v10  ;;  %2987 = vmatmul.msk.bf16.gmra.mxu3 %vm1029_vm2, %v2712_v15 }
  0x7a   : > { %1257 = vmatmul.bf16.gmra.mxu0 %v2436_v16  ;;  %1417 = vmatmul.bf16.gmra.mxu2 %v2692_v17 }
  0x89   : > { %2955 = vmatmul.msk.bf16.gmra.mxu1 %vm1029_vm2, %v2456_v22  ;;  %2988 = vmatmul.msk.bf16.gmra.mxu3 %vm1029_vm2, %v2720_v27  ;;  %v2749_v22 = vld [vmem:[%s3391_s18 + $0x2b8] sm:$0xf0] }
  0x8a   : > { %1262 = vmatmul.bf16.gmra.mxu0 %v2444_v28  ;;  %1422 = vmatmul.bf16.gmra.mxu2 %v2700_v29  ;;  %v2731_v29 = vld [vmem:[%s3391_s18 + $0x290] sm:$0xf]  ;;  %v2752_v31 = vor.u32 %v3103_v21, %v2749_v22  ;;  %v3041_v22 = vld [vmem:[%s3391_s18 + $0xc4] sm:$0xf] }
  0x8b   : > { %v2732_v36 = vor.u32 %v3100_v30, %v2731_v29 }
  0x99   : > { %2956 = vmatmul.msk.bf16.gmra.mxu1 %vm1029_vm2, %v2464_v34  ;;  %2989 = vmatmul.msk.bf16.gmra.mxu3 %vm1029_vm2, %v2728_v39  ;;  %v2476_v34 = vor.u32 %v3036_v25, %v2475_v24 }
  0x9a   : > { %1267 = vmatmul.bf16.gmra.mxu0 %v2452_v40  ;;  %1427 = vmatmul.bf16.gmra.mxu2 %v2708_v41 }
  0xa6   : > { %v1567_v49 = vpop.f32.mrf.mxu1 }
  0xa9   : > { %2957 = vmatmul.msk.bf16.gmra.mxu1 %vm1029_vm2, %v2472_v46  ;;  %2990 = vmatmul.msk.bf16.gmra.mxu3 %vm1029_vm2, %v2736_v52  ;;  %v2757_v52 = vld [vmem:[%s3391_s18 + $0x2c8] sm:$0xf0] }
  0xaa   : > { %1272 = vmatmul.bf16.gmra.mxu0 %v2460_v53  ;;  %1432 = vmatmul.bf16.gmra.mxu2 %v2716_v54  ;;  %v2496_v54 = vor.u32 %v3039_v47, %v2493_v48  ;;  %v2760_v63 = vor.u32 %v3105_v51, %v2757_v52 }
  0xac   : > { %v3513_v55 = vpop.f32.mrf.mxu3 }
  0xae   : > { %v1569_v56 = vpop.f32.mrf.mxu1 }
  0xb4   : > { %v3522_v0 = vpop.f32.mrf.mxu3 }
  0xb6   : > { %v1572_v1 = vpop.f32.mrf.mxu1 }
  0xb7   : > { %v1238_v7 = vpop.f32.mrf.mxu0 }
  0xb8   : > { %v1239_v9 = vadd.f32 %v3527_v2, %v1238_v7 }
  0xb9   : > { %2958 = vmatmul.msk.bf16.gmra.mxu1 %vm1029_vm2, %v2480_v61  ;;  %2991 = vmatmul.msk.bf16.gmra.mxu3 %vm1029_vm2, %v2744_v5  ;;  %v2739_v61 = vld [vmem:[%s3391_s18 + $0x2a0] sm:$0xf] }
  0xba   : > { %v1568_v10 = vadd.f32 %v1567_v49, %v1239_v9  ;;  %1277 = vmatmul.bf16.gmra.mxu0 %v2468_v6  ;;  %1437 = vmatmul.bf16.gmra.mxu2 %v2724_v8  ;;  %v2740_v7 = vor.u32 %v3102_v62, %v2739_v61  ;;  %v3043_v61 = vld [vmem:[%s3391_s18 + $0xd4] sm:$0xf]  ;;  %v2509_v62 = vld [vmem:[%s3391_s18 + $0xd8] sm:$0xf0] }
  0xbc   : > { %v3535_v11 = vpop.f32.mrf.mxu3  ;;  %v1887_v12 = vmax.f32 %v1568_v10, 0.0 }
  0xbd   : > { %v3542_v15 = vpop.f32.mrf.mxu2 }
  0xbe   : > { %v1574_v13 = vpop.f32.mrf.mxu1  ;;  %v2015_v14 = vpack.c.bf16 %v1887_v12, %v1887_v12 }
  0xbf   : > { %v1240_v16 = vpop.f32.mrf.mxu0 }
  0xc0   : > { %2144 = vst.msk [vmem:[%s3540_s27] sm:$0xf] %vm2143_vm3, %v2015_v14  ;;  %v1241_v17 = vadd.f32 %v3527_v2, %v1240_v16 }
  0xc2   : > { %v1570_v20 = vadd.f32 %v1569_v56, %v1241_v17  ;;  %v2483_v56 = vld [vmem:[%s3391_s18 + $0xa0] sm:$0xf] }
  0xc4   : > { %v3553_v26 = vpop.f32.mrf.mxu3  ;;  %v1888_v27 = vmax.f32 %v1570_v20, 0.0 }
  0xc5   : > { %v3557_v33 = vpop.f32.mrf.mxu2 }
  0xc6   : > { %v1577_v28 = vpop.f32.mrf.mxu1  ;;  %v2016_v32 = vpack.c.bf16 %v1888_v27, %v1888_v27  ;;  %v3107_v27 = vld [vmem:[%s3391_s18 + $0x2d4] sm:$0xf] }
  0xc7   : > { %v1243_v35 = vpop.f32.mrf.mxu0 }
  0xc8   : > { %2145 = vst.msk [vmem:[%s3540_s27 + $0x4] sm:$0xf] %vm2143_vm3, %v2016_v32  ;;  %v1244_v37 = vadd.f32 %v3527_v2, %v1243_v35  ;;  %v3040_v32 = vld [vmem:[%s3391_s18 + $0xb4] sm:$0xf0] }
  0xc9   : > { %2959 = vmatmul.msk.bf16.gmra.mxu1 %vm1029_vm2, %v2488_v23  ;;  %2992 = vmatmul.msk.bf16.gmra.mxu3 %vm1029_vm2, %v2752_v31  ;;  %v2501_v23 = vld [vmem:[%s3391_s18 + $0xc8] sm:$0xf0]  ;;  %v2491_v31 = vld [vmem:[%s3391_s18 + $0xb0] sm:$0xf] }
  0xca   : > { %v1573_v38 = vadd.f32 %v1572_v1, %v1244_v37  ;;  %1282 = vmatmul.bf16.gmra.mxu0 %v2476_v34  ;;  %1442 = vmatmul.bf16.gmra.mxu2 %v2732_v36  ;;  %v2504_v30 = vor.u32 %v3041_v22, %v2501_v23  ;;  %v2747_v37 = vld [vmem:[%s3391_s18 + $0x2b0] sm:$0xf] }
  0xcc   : > { %v3564_v39 = vpop.f32.mrf.mxu3  ;;  %v1889_v40 = vmax.f32 %v1573_v38, 0.0  ;;  %v3104_v38 = vld [vmem:[%s3391_s18 + $0x2b4] sm:$0xf0] }
  0xcd   : > { %v1403_v43 = vpop.f32.mrf.mxu2 }
  0xce   : > { %v1579_v41 = vpop.f32.mrf.mxu1  ;;  %v2017_v42 = vpack.c.bf16 %v1889_v40, %v1889_v40  ;;  %v1404_v44 = vadd.f32 %v3527_v2, %v1403_v43 }
  0xcf   : > { %v1245_v45 = vpop.f32.mrf.mxu0 }
  0xd0   : > { %2146 = vst.msk [vmem:[%s3540_s27 + $0x8] sm:$0xf] %vm2143_vm3, %v2017_v42  ;;  %v1246_v46 = vadd.f32 %v3527_v2, %v1245_v45  ;;  %v1733_v49 = vadd.f32 %v3513_v55, %v1404_v44  ;;  %v2484_v55 = vor.u32 %v3038_v57, %v2483_v56 }
  0xd2   : > { %v1575_v50 = vadd.f32 %v1574_v13, %v1246_v46  ;;  %v1953_v53 = vmax.f32 %v1733_v49, 0.0  ;;  %v2748_v46 = vor.u32 %v3104_v38, %v2747_v37  ;;  %v3045_v37 = vld [vmem:[%s3391_s18 + $0xe4] sm:$0xf]  ;;  %v2517_v38 = vld [vmem:[%s3391_s18 + $0xe8] sm:$0xf0] }
  0xd4   : > { %v3577_v58 = vpop.f32.mrf.mxu3  ;;  %v1890_v59 = vmax.f32 %v1575_v50, 0.0  ;;  %v2081_v1 = vpack.c.bf16 %v1953_v53, %v1953_v53 }
  0xd5   : > { %v1405_v4 = vpop.f32.mrf.mxu2 }
  0xd6   : > { %v1582_v60 = vpop.f32.mrf.mxu1  ;;  %v2018_v3 = vpack.c.bf16 %v1890_v59, %v1890_v59  ;;  %2210 = vst.msk [vmem:[%s3540_s27 + $0x108] sm:$0xf] %vm2143_vm3, %v2081_v1  ;;  %v1406_v5 = vadd.f32 %v3527_v2, %v1405_v4  ;;  %v2773_v4 = vld [vmem:[%s3391_s18 + $0x2e8] sm:$0xf0] }
  0xd7   : > { %v1248_v6 = vpop.f32.mrf.mxu0 }
  0xd8   : > { %2147 = vst.msk [vmem:[%s3540_s27 + $0xc] sm:$0xf] %vm2143_vm3, %v2018_v3  ;;  %v1249_v8 = vadd.f32 %v3527_v2, %v1248_v6  ;;  %v1735_v9 = vadd.f32 %v3522_v0, %v1406_v5  ;;  %v3109_v3 = vld [vmem:[%s3391_s18 + $0x2e4] sm:$0xf]  ;;  %v2512_v5 = vor.u32 %v3043_v61, %v2509_v62  ;;  %v2499_v6 = vld [vmem:[%s3391_s18 + $0xc0] sm:$0xf] }
  0xd9   : > { %2960 = vmatmul.msk.bf16.gmra.mxu1 %vm1029_vm2, %v2496_v54  ;;  %2993 = vmatmul.msk.bf16.gmra.mxu3 %vm1029_vm2, %v2760_v63 }
  0xda   : > { %v1578_v10 = vadd.f32 %v1577_v28, %v1249_v8  ;;  %1287 = vmatmul.bf16.gmra.mxu0 %v2484_v55  ;;  %v1954_v12 = vmax.f32 %v1735_v9, 0.0  ;;  %1447 = vmatmul.bf16.gmra.mxu2 %v2740_v7  ;;  %v2765_v28 = vld [vmem:[%s3391_s18 + $0x2d8] sm:$0xf0]  ;;  %v3042_v7 = vld [vmem:[%s3391_s18 + $0xc4] sm:$0xf0] }
  0xdb   : > { %v2768_v40 = vor.u32 %v3107_v27, %v2765_v28 }
  0xdc   : > { %v3590_v13 = vpop.f32.mrf.mxu3  ;;  %v1891_v14 = vmax.f32 %v1578_v10, 0.0  ;;  %v2082_v17 = vpack.c.bf16 %v1954_v12, %v1954_v12  ;;  %v2755_v12 = vld [vmem:[%s3391_s18 + $0x2c0] sm:$0xf] }
  0xdd   : > { %v1408_v19 = vpop.f32.mrf.mxu2 }
  0xde   : > { %v1584_v16 = vpop.f32.mrf.mxu1  ;;  %v2019_v18 = vpack.c.bf16 %v1891_v14, %v1891_v14  ;;  %2211 = vst.msk [vmem:[%s3540_s27 + $0x10c] sm:$0xf] %vm2143_vm3, %v2082_v17  ;;  %v1409_v0 = vadd.f32 %v3527_v2, %v1408_v19  ;;  %v3106_v14 = vld [vmem:[%s3391_s18 + $0x2c4] sm:$0xf0]  ;;  %v2776_v17 = vor.u32 %v3109_v3, %v2773_v4 }
  0xdf   : > { %v1250_v20 = vpop.f32.mrf.mxu0 }
  0xe0   : > { %2148 = vst.msk [vmem:[%s3540_s27 + $0x10] sm:$0xf] %vm2143_vm3, %v2019_v18  ;;  %v1251_v21 = vadd.f32 %v3527_v2, %v1250_v20  ;;  %v1738_v24 = vadd.f32 %v3535_v11, %v1409_v0  ;;  %v2492_v11 = vor.u32 %v3040_v32, %v2491_v31 }
  0xe2   : > { %v1580_v25 = vadd.f32 %v1579_v41, %v1251_v21  ;;  %v1955_v29 = vmax.f32 %v1738_v24, 0.0  ;;  %v2756_v21 = vor.u32 %v3106_v14, %v2755_v12  ;;  %v3047_v12 = vld [vmem:[%s3391_s18 + $0xf4] sm:$0xf]  ;;  %v2525_v14 = vld [vmem:[%s3391_s18 + $0xf8] sm:$0xf0] }
  0xe4   : > { %v3605_v34 = vpop.f32.mrf.mxu3  ;;  %v1892_v35 = vmax.f32 %v1580_v25, 0.0  ;;  %v2083_v42 = vpack.c.bf16 %v1955_v29, %v1955_v29 }
  0xe5   : > { %v1410_v44 = vpop.f32.mrf.mxu2 }
  0xe6   : > { %v1587_v36 = vpop.f32.mrf.mxu1  ;;  %v2020_v43 = vpack.c.bf16 %v1892_v35, %v1892_v35  ;;  %2212 = vst.msk [vmem:[%s3540_s27 + $0x110] sm:$0xf] %vm2143_vm3, %v2083_v42  ;;  %v1411_v41 = vadd.f32 %v3527_v2, %v1410_v44  ;;  %v2781_v44 = vld [vmem:[%s3391_s18 + $0x2f8] sm:$0xf0] }
  0xe7   : > { %v1253_v45 = vpop.f32.mrf.mxu0 }
  0xe8   : > { %2149 = vst.msk [vmem:[%s3540_s27 + $0x14] sm:$0xf] %vm2143_vm3, %v2020_v43  ;;  %v1254_v47 = vadd.f32 %v3527_v2, %v1253_v45  ;;  %v1740_v48 = vadd.f32 %v3553_v26, %v1411_v41  ;;  %v3111_v43 = vld [vmem:[%s3391_s18 + $0x2f4] sm:$0xf]  ;;  %v2520_v41 = vor.u32 %v3045_v37, %v2517_v38  ;;  %v2507_v45 = vld [vmem:[%s3391_s18 + $0xd0] sm:$0xf] }
  0xe9   : > { %2961 = vmatmul.msk.bf16.gmra.mxu1 %vm1029_vm2, %v2504_v30  ;;  %2994 = vmatmul.msk.bf16.gmra.mxu3 %vm1029_vm2, %v2768_v40 }
  0xea   : > { %v1583_v49 = vadd.f32 %v1582_v60, %v1254_v47  ;;  %1292 = vmatmul.bf16.gmra.mxu0 %v2492_v11  ;;  %v1956_v50 = vmax.f32 %v1740_v48, 0.0  ;;  %1452 = vmatmul.bf16.gmra.mxu2 %v2748_v46  ;;  %v3044_v46 = vld [vmem:[%s3391_s18 + $0xd4] sm:$0xf0] }
  0xec   : > { %v3618_v51 = vpop.f32.mrf.mxu3  ;;  %v1893_v52 = vmax.f32 %v1583_v49, 0.0  ;;  %v2084_v54 = vpack.c.bf16 %v1956_v50, %v1956_v50  ;;  %v2763_v50 = vld [vmem:[%s3391_s18 + $0x2d0] sm:$0xf] }
  0xed   : > { %v1413_v57 = vpop.f32.mrf.mxu2 }
  0xee   : > { %v1589_v53 = vpop.f32.mrf.mxu1  ;;  %v2021_v56 = vpack.c.bf16 %v1893_v52, %v1893_v52  ;;  %2213 = vst.msk [vmem:[%s3540_s27 + $0x114] sm:$0xf] %vm2143_vm3, %v2084_v54  ;;  %v1414_v26 = vadd.f32 %v3527_v2, %v1413_v57  ;;  %v3108_v52 = vld [vmem:[%s3391_s18 + $0x2d4] sm:$0xf0]  ;;  %v2784_v54 = vor.u32 %v3111_v43, %v2781_v44 }
  0xef   : > { %v1255_v59 = vpop.f32.mrf.mxu0 }
  0xf0   : > { %2150 = vst.msk [vmem:[%s3540_s27 + $0x18] sm:$0xf] %vm2143_vm3, %v2021_v56  ;;  %v1256_v60 = vadd.f32 %v3527_v2, %v1255_v59  ;;  %v1743_v63 = vadd.f32 %v3564_v39, %v1414_v26  ;;  %v2500_v39 = vor.u32 %v3042_v7, %v2499_v6 }
  0xf2   : > { %v1585_v1 = vadd.f32 %v1584_v16, %v1256_v60  ;;  %v1957_v55 = vmax.f32 %v1743_v63, 0.0  ;;  %v2764_v60 = vor.u32 %v3108_v52, %v2763_v50  ;;  %v3049_v50 = vld [vmem:[%s3391_s18 + $0x104] sm:$0xf]  ;;  %v2533_v52 = vld [vmem:[%s3391_s18 + $0x108] sm:$0xf0] }
  0xf4   : > { %v3633_v8 = vpop.f32.mrf.mxu3  ;;  %v1894_v9 = vmax.f32 %v1585_v1, 0.0  ;;  %v2085_v18 = vpack.c.bf16 %v1957_v55, %v1957_v55 }
  0xf5   : > { %v1415_v0 = vpop.f32.mrf.mxu2 }
  0xf6   : > { %v1592_v10 = vpop.f32.mrf.mxu1  ;;  %v2022_v19 = vpack.c.bf16 %v1894_v9, %v1894_v9  ;;  %2214 = vst.msk [vmem:[%s3540_s27 + $0x118] sm:$0xf] %vm2143_vm3, %v2085_v18  ;;  %v1416_v16 = vadd.f32 %v3527_v2, %v1415_v0  ;;  %v2789_v0 = vld [vmem:[%s3391_s18 + $0x308] sm:$0xf0] }
  0xf7   : > { %v1258_v20 = vpop.f32.mrf.mxu0 }
  0xf8   : > { %2151 = vst.msk [vmem:[%s3540_s27 + $0x1c] sm:$0xf] %vm2143_vm3, %v2022_v19  ;;  %v1259_v22 = vadd.f32 %v3527_v2, %v1258_v20  ;;  %v1745_v23 = vadd.f32 %v3577_v58, %v1416_v16  ;;  %v3113_v19 = vld [vmem:[%s3391_s18 + $0x304] sm:$0xf]  ;;  %v2528_v16 = vor.u32 %v3047_v12, %v2525_v14  ;;  %v2515_v20 = vld [vmem:[%s3391_s18 + $0xe0] sm:$0xf] }
  0xf9   : > { %2962 = vmatmul.msk.bf16.gmra.mxu1 %vm1029_vm2, %v2512_v5  ;;  %2995 = vmatmul.msk.bf16.gmra.mxu3 %vm1029_vm2, %v2776_v17 }
  0xfa   : > { %v1588_v24 = vadd.f32 %v1587_v36, %v1259_v22  ;;  %1297 = vmatmul.bf16.gmra.mxu0 %v2500_v39  ;;  %v1958_v25 = vmax.f32 %v1745_v23, 0.0  ;;  %1457 = vmatmul.bf16.gmra.mxu2 %v2756_v21  ;;  %v3046_v21 = vld [vmem:[%s3391_s18 + $0xe4] sm:$0xf0] }
  0xfc   : > { %v3646_v27 = vpop.f32.mrf.mxu3  ;;  %v1895_v28 = vmax.f32 %v1588_v24, 0.0  ;;  %v2086_v30 = vpack.c.bf16 %v1958_v25, %v1958_v25  ;;  %v2771_v25 = vld [vmem:[%s3391_s18 + $0x2e0] sm:$0xf] }
  0xfd   : > { %v1418_v32 = vpop.f32.mrf.mxu2 }
  0xfe   : > { %v1594_v29 = vpop.f32.mrf.mxu1  ;;  %v2023_v31 = vpack.c.bf16 %v1895_v28, %v1895_v28  ;;  %2215 = vst.msk [vmem:[%s3540_s27 + $0x11c] sm:$0xf] %vm2143_vm3, %v2086_v30  ;;  %v1419_v58 = vadd.f32 %v3527_v2, %v1418_v32  ;;  %v3110_v28 = vld [vmem:[%s3391_s18 + $0x2e4] sm:$0xf0]  ;;  %v2792_v30 = vor.u32 %v3113_v19, %v2789_v0 }
  0xff   : > { %v1260_v35 = vpop.f32.mrf.mxu0 }
 0x100   : > { %2152 = vst.msk [vmem:[%s3540_s27 + $0x20] sm:$0xf] %vm2143_vm3, %v2023_v31  ;;  %v1261_v36 = vadd.f32 %v3527_v2, %v1260_v35  ;;  %v1748_v40 = vadd.f32 %v3590_v13, %v1419_v58  ;;  %v2508_v13 = vor.u32 %v3044_v46, %v2507_v45 }
 0x102   : > { %v1590_v42 = vadd.f32 %v1589_v53, %v1261_v36  ;;  %v1959_v11 = vmax.f32 %v1748_v40, 0.0  ;;  %v2772_v36 = vor.u32 %v3110_v28, %v2771_v25  ;;  %v3051_v25 = vld [vmem:[%s3391_s18 + $0x114] sm:$0xf]  ;;  %v2541_v28 = vld [vmem:[%s3391_s18 + $0x118] sm:$0xf0] }
 0x104   : > { %v3661_v47 = vpop.f32.mrf.mxu3  ;;  %v1896_v48 = vmax.f32 %v1590_v42, 0.0  ;;  %v2087_v56 = vpack.c.bf16 %v1959_v11, %v1959_v11 }
 0x105   : > { %v1420_v26 = vpop.f32.mrf.mxu2 }
 0x106   : > { %v1597_v49 = vpop.f32.mrf.mxu1  ;;  %v2024_v57 = vpack.c.bf16 %v1896_v48, %v1896_v48  ;;  %2216 = vst.msk [vmem:[%s3540_s27 + $0x120] sm:$0xf] %vm2143_vm3, %v2087_v56  ;;  %v1421_v53 = vadd.f32 %v3527_v2, %v1420_v26  ;;  %v2797_v26 = vld [vmem:[%s3391_s18 + $0x318] sm:$0xf0] }
 0x107   : > { %v1263_v59 = vpop.f32.mrf.mxu0 }
 0x108   : > { %2153 = vst.msk [vmem:[%s3540_s27 + $0x24] sm:$0xf] %vm2143_vm3, %v2024_v57  ;;  %v1264_v61 = vadd.f32 %v3527_v2, %v1263_v59  ;;  %v1750_v62 = vadd.f32 %v3605_v34, %v1421_v53  ;;  %v3115_v57 = vld [vmem:[%s3391_s18 + $0x314] sm:$0xf]  ;;  %v2536_v53 = vor.u32 %v3049_v50, %v2533_v52  ;;  %v2523_v59 = vld [vmem:[%s3391_s18 + $0xf0] sm:$0xf] }
 0x109   : > { %2963 = vmatmul.msk.bf16.gmra.mxu1 %vm1029_vm2, %v2520_v41  ;;  %2996 = vmatmul.msk.bf16.gmra.mxu3 %vm1029_vm2, %v2784_v54 }
 0x10a   : > { %v1593_v63 = vadd.f32 %v1592_v10, %v1264_v61  ;;  %1302 = vmatmul.bf16.gmra.mxu0 %v2508_v13  ;;  %v1960_v1 = vmax.f32 %v1750_v62, 0.0  ;;  %1462 = vmatmul.bf16.gmra.mxu2 %v2764_v60  ;;  %v3048_v60 = vld [vmem:[%s3391_s18 + $0xf4] sm:$0xf0] }
 0x10c   : > { %v3674_v3 = vpop.f32.mrf.mxu3  ;;  %v1897_v4 = vmax.f32 %v1593_v63, 0.0  ;;  %v2088_v5 = vpack.c.bf16 %v1960_v1, %v1960_v1  ;;  %v2779_v1 = vld [vmem:[%s3391_s18 + $0x2f0] sm:$0xf] }
 0x10d   : > { %v1423_v7 = vpop.f32.mrf.mxu2 }
 0x10e   : > { %v1599_v55 = vpop.f32.mrf.mxu1  ;;  %v2025_v6 = vpack.c.bf16 %v1897_v4, %v1897_v4  ;;  %2217 = vst.msk [vmem:[%s3540_s27 + $0x124] sm:$0xf] %vm2143_vm3, %v2088_v5  ;;  %v1424_v34 = vadd.f32 %v3527_v2, %v1423_v7  ;;  %v3112_v4 = vld [vmem:[%s3391_s18 + $0x2f4] sm:$0xf0]  ;;  %v2800_v5 = vor.u32 %v3115_v57, %v2797_v26 }
 0x10f   : > { %v1265_v9 = vpop.f32.mrf.mxu0 }
 0x110   : > { %2154 = vst.msk [vmem:[%s3540_s27 + $0x28] sm:$0xf] %vm2143_vm3, %v2025_v6  ;;  %v1266_v10 = vadd.f32 %v3527_v2, %v1265_v9  ;;  %v1753_v17 = vadd.f32 %v3618_v51, %v1424_v34  ;;  %v2516_v51 = vor.u32 %v3046_v21, %v2515_v20 }
 0x112   : > { %v1595_v18 = vadd.f32 %v1594_v29, %v1266_v10  ;;  %v1961_v39 = vmax.f32 %v1753_v17, 0.0  ;;  %v2780_v10 = vor.u32 %v3112_v4, %v2779_v1  ;;  %v3053_v1 = vld [vmem:[%s3391_s18 + $0x124] sm:$0xf]  ;;  %v2549_v4 = vld [vmem:[%s3391_s18 + $0x128] sm:$0xf0] }
 0x114   : > { %v3689_v22 = vpop.f32.mrf.mxu3  ;;  %v1898_v23 = vmax.f32 %v1595_v18, 0.0  ;;  %v2089_v31 = vpack.c.bf16 %v1961_v39, %v1961_v39 }
 0x115   : > { %v1425_v58 = vpop.f32.mrf.mxu2 }
 0x116   : > { %v1602_v24 = vpop.f32.mrf.mxu1  ;;  %v2026_v32 = vpack.c.bf16 %v1898_v23, %v1898_v23  ;;  %2218 = vst.msk [vmem:[%s3540_s27 + $0x128] sm:$0xf] %vm2143_vm3, %v2089_v31  ;;  %v1426_v29 = vadd.f32 %v3527_v2, %v1425_v58  ;;  %v2805_v58 = vld [vmem:[%s3391_s18 + $0x328] sm:$0xf0] }
 0x117   : > { %v1268_v35 = vpop.f32.mrf.mxu0 }
 0x118   : > { %2155 = vst.msk [vmem:[%s3540_s27 + $0x2c] sm:$0xf] %vm2143_vm3, %v2026_v32  ;;  %v1269_v37 = vadd.f32 %v3527_v2, %v1268_v35  ;;  %v1755_v38 = vadd.f32 %v3633_v8, %v1426_v29  ;;  %v3117_v32 = vld [vmem:[%s3391_s18 + $0x324] sm:$0xf]  ;;  %v2544_v29 = vor.u32 %v3051_v25, %v2541_v28  ;;  %v2531_v35 = vld [vmem:[%s3391_s18 + $0x100] sm:$0xf] }
 0x119   : > { %2964 = vmatmul.msk.bf16.gmra.mxu1 %vm1029_vm2, %v2528_v16  ;;  %2997 = vmatmul.msk.bf16.gmra.mxu3 %vm1029_vm2, %v2792_v30 }
 0x11a   : > { %v1598_v40 = vadd.f32 %v1597_v49, %v1269_v37  ;;  %1307 = vmatmul.bf16.gmra.mxu0 %v2516_v51  ;;  %v1962_v42 = vmax.f32 %v1755_v38, 0.0  ;;  %1467 = vmatmul.bf16.gmra.mxu2 %v2772_v36  ;;  %v3050_v36 = vld [vmem:[%s3391_s18 + $0x104] sm:$0xf0] }
 0x11c   : > { %v3702_v43 = vpop.f32.mrf.mxu3  ;;  %v1899_v44 = vmax.f32 %v1598_v40, 0.0  ;;  %v2090_v41 = vpack.c.bf16 %v1962_v42, %v1962_v42  ;;  %v2787_v42 = vld [vmem:[%s3391_s18 + $0x300] sm:$0xf] }
 0x11d   : > { %v1428_v46 = vpop.f32.mrf.mxu2 }
 0x11e   : > { %v1604_v11 = vpop.f32.mrf.mxu1  ;;  %v2027_v45 = vpack.c.bf16 %v1899_v44, %v1899_v44  ;;  %2219 = vst.msk [vmem:[%s3540_s27 + $0x12c] sm:$0xf] %vm2143_vm3, %v2090_v41  ;;  %v1429_v8 = vadd.f32 %v3527_v2, %v1428_v46  ;;  %v3114_v44 = vld [vmem:[%s3391_s18 + $0x304] sm:$0xf0]  ;;  %v2808_v41 = vor.u32 %v3117_v32, %v2805_v58 }
 0x11f   : > { %v1270_v48 = vpop.f32.mrf.mxu0 }
 0x120   : > { %2156 = vst.msk [vmem:[%s3540_s27 + $0x30] sm:$0xf] %vm2143_vm3, %v2027_v45  ;;  %v1271_v49 = vadd.f32 %v3527_v2, %v1270_v48  ;;  %v1758_v54 = vadd.f32 %v3646_v27, %v1429_v8  ;;  %v2524_v27 = vor.u32 %v3048_v60, %v2523_v59 }
 0x122   : > { %v1600_v56 = vadd.f32 %v1599_v55, %v1271_v49  ;;  %v1963_v13 = vmax.f32 %v1758_v54, 0.0  ;;  %v2788_v49 = vor.u32 %v3114_v44, %v2787_v42  ;;  %v3055_v42 = vld [vmem:[%s3391_s18 + $0x134] sm:$0xf]  ;;  %v2557_v44 = vld [vmem:[%s3391_s18 + $0x138] sm:$0xf0] }
 0x124   : > { %v3717_v61 = vpop.f32.mrf.mxu3  ;;  %v1900_v62 = vmax.f32 %v1600_v56, 0.0  ;;  %v2091_v6 = vpack.c.bf16 %v1963_v13, %v1963_v13 }
 0x125   : > { %v1430_v34 = vpop.f32.mrf.mxu2 }
 0x126   : > { %v1607_v63 = vpop.f32.mrf.mxu1  ;;  %v2028_v7 = vpack.c.bf16 %v1900_v62, %v1900_v62  ;;  %2220 = vst.msk [vmem:[%s3540_s27 + $0x130] sm:$0xf] %vm2143_vm3, %v2091_v6  ;;  %v1431_v55 = vadd.f32 %v3527_v2, %v1430_v34  ;;  %v2813_v34 = vld [vmem:[%s3391_s18 + $0x338] sm:$0xf0] }
 0x127   : > { %v1273_v9 = vpop.f32.mrf.mxu0 }
 0x128   : > { %2157 = vst.msk [vmem:[%s3540_s27 + $0x34] sm:$0xf] %vm2143_vm3, %v2028_v7  ;;  %v1274_v12 = vadd.f32 %v3527_v2, %v1273_v9  ;;  %v1760_v14 = vadd.f32 %v3661_v47, %v1431_v55  ;;  %v3119_v7 = vld [vmem:[%s3391_s18 + $0x334] sm:$0xf]  ;;  %v2552_v55 = vor.u32 %v3053_v1, %v2549_v4  ;;  %v2539_v9 = vld [vmem:[%s3391_s18 + $0x110] sm:$0xf] }
 0x129   : > { %2965 = vmatmul.msk.bf16.gmra.mxu1 %vm1029_vm2, %v2536_v53  ;;  %2998 = vmatmul.msk.bf16.gmra.mxu3 %vm1029_vm2, %v2800_v5 }
 0x12a   : > { %v1603_v17 = vadd.f32 %v1602_v24, %v1274_v12  ;;  %1312 = vmatmul.bf16.gmra.mxu0 %v2524_v27  ;;  %v1964_v18 = vmax.f32 %v1760_v14, 0.0  ;;  %1472 = vmatmul.bf16.gmra.mxu2 %v2780_v10  ;;  %v3052_v10 = vld [vmem:[%s3391_s18 + $0x114] sm:$0xf0] }
 0x12c   : > { %v3730_v19 = vpop.f32.mrf.mxu3  ;;  %v1901_v0 = vmax.f32 %v1603_v17, 0.0  ;;  %v2092_v16 = vpack.c.bf16 %v1964_v18, %v1964_v18  ;;  %v2795_v18 = vld [vmem:[%s3391_s18 + $0x310] sm:$0xf] }
 0x12d   : > { %v1433_v21 = vpop.f32.mrf.mxu2 }
 0x12e   : > { %v1609_v39 = vpop.f32.mrf.mxu1  ;;  %v2029_v20 = vpack.c.bf16 %v1901_v0, %v1901_v0  ;;  %2221 = vst.msk [vmem:[%s3540_s27 + $0x134] sm:$0xf] %vm2143_vm3, %v2092_v16  ;;  %v1434_v47 = vadd.f32 %v3527_v2, %v1433_v21  ;;  %v3116_v0 = vld [vmem:[%s3391_s18 + $0x314] sm:$0xf0]  ;;  %v2816_v16 = vor.u32 %v3119_v7, %v2813_v34 }
 0x12f   : > { %v1275_v23 = vpop.f32.mrf.mxu0 }
 0x130   : > { %2158 = vst.msk [vmem:[%s3540_s27 + $0x38] sm:$0xf] %vm2143_vm3, %v2029_v20  ;;  %v1276_v24 = vadd.f32 %v3527_v2, %v1275_v23  ;;  %v1763_v30 = vadd.f32 %v3674_v3, %v1434_v47  ;;  %v2532_v3 = vor.u32 %v3050_v36, %v2531_v35 }
 0x132   : > { %v1605_v31 = vadd.f32 %v1604_v11, %v1276_v24  ;;  %v1965_v51 = vmax.f32 %v1763_v30, 0.0  ;;  %v2796_v24 = vor.u32 %v3116_v0, %v2795_v18  ;;  %v3057_v18 = vld [vmem:[%s3391_s18 + $0x144] sm:$0xf]  ;;  %v2565_v0 = vld [vmem:[%s3391_s18 + $0x148] sm:$0xf0] }
 0x134   : > { %v3745_v37 = vpop.f32.mrf.mxu3  ;;  %v1902_v38 = vmax.f32 %v1605_v31, 0.0  ;;  %v2093_v45 = vpack.c.bf16 %v1965_v51, %v1965_v51 }
 0x135   : > { %v1435_v8 = vpop.f32.mrf.mxu2 }
 0x136   : > { %v1612_v40 = vpop.f32.mrf.mxu1  ;;  %v2030_v46 = vpack.c.bf16 %v1902_v38, %v1902_v38  ;;  %2222 = vst.msk [vmem:[%s3540_s27 + $0x138] sm:$0xf] %vm2143_vm3, %v2093_v45  ;;  %v1436_v11 = vadd.f32 %v3527_v2, %v1435_v8  ;;  %v2821_v8 = vld [vmem:[%s3391_s18 + $0x348] sm:$0xf0] }
 0x137   : > { %v1278_v48 = vpop.f32.mrf.mxu0 }
 0x138   : > { %2159 = vst.msk [vmem:[%s3540_s27 + $0x3c] sm:$0xf] %vm2143_vm3, %v2030_v46  ;;  %v1279_v50 = vadd.f32 %v3527_v2, %v1278_v48  ;;  %v1765_v52 = vadd.f32 %v3689_v22, %v1436_v11  ;;  %v3121_v46 = vld [vmem:[%s3391_s18 + $0x344] sm:$0xf]  ;;  %v2560_v11 = vor.u32 %v3055_v42, %v2557_v44  ;;  %v2547_v48 = vld [vmem:[%s3391_s18 + $0x120] sm:$0xf] }
 0x139   : > { %2966 = vmatmul.msk.bf16.gmra.mxu1 %vm1029_vm2, %v2544_v29  ;;  %2999 = vmatmul.msk.bf16.gmra.mxu3 %vm1029_vm2, %v2808_v41 }
 0x13a   : > { %v1608_v54 = vadd.f32 %v1607_v63, %v1279_v50  ;;  %1317 = vmatmul.bf16.gmra.mxu0 %v2532_v3  ;;  %v1966_v56 = vmax.f32 %v1765_v52, 0.0  ;;  %1477 = vmatmul.bf16.gmra.mxu2 %v2788_v49  ;;  %v3054_v49 = vld [vmem:[%s3391_s18 + $0x124] sm:$0xf0] }
 0x13c   : > { %v3758_v57 = vpop.f32.mrf.mxu3  ;;  %v1903_v26 = vmax.f32 %v1608_v54, 0.0  ;;  %v2094_v53 = vpack.c.bf16 %v1966_v56, %v1966_v56  ;;  %v2803_v56 = vld [vmem:[%s3391_s18 + $0x320] sm:$0xf] }
 0x13d   : > { %v1438_v60 = vpop.f32.mrf.mxu2 }
 0x13e   : > { %v1614_v13 = vpop.f32.mrf.mxu1  ;;  %v2031_v59 = vpack.c.bf16 %v1903_v26, %v1903_v26  ;;  %2223 = vst.msk [vmem:[%s3540_s27 + $0x13c] sm:$0xf] %vm2143_vm3, %v2094_v53  ;;  %v1439_v22 = vadd.f32 %v3527_v2, %v1438_v60  ;;  %v3118_v26 = vld [vmem:[%s3391_s18 + $0x324] sm:$0xf0]  ;;  %v2824_v53 = vor.u32 %v3121_v46, %v2821_v8 }
 0x13f   : > { %v1280_v62 = vpop.f32.mrf.mxu0 }
 0x140   : > { %2160 = vst.msk [vmem:[%s3540_s27 + $0x40] sm:$0xf] %vm2143_vm3, %v2031_v59  ;;  %v1281_v63 = vadd.f32 %v3527_v2, %v1280_v62  ;;  %v1768_v5 = vadd.f32 %v3702_v43, %v1439_v22  ;;  %v2540_v43 = vor.u32 %v3052_v10, %v2539_v9 }
 0x142   : > { %v1610_v6 = vadd.f32 %v1609_v39, %v1281_v63  ;;  %v1967_v27 = vmax.f32 %v1768_v5, 0.0  ;;  %v2804_v63 = vor.u32 %v3118_v26, %v2803_v56  ;;  %v3059_v56 = vld [vmem:[%s3391_s18 + $0x154] sm:$0xf]  ;;  %v2573_v26 = vld [vmem:[%s3391_s18 + $0x158] sm:$0xf0] }
 0x144   : > { %v3773_v12 = vpop.f32.mrf.mxu3  ;;  %v1904_v14 = vmax.f32 %v1610_v6, 0.0  ;;  %v2095_v20 = vpack.c.bf16 %v1967_v27, %v1967_v27 }
 0x145   : > { %v1440_v47 = vpop.f32.mrf.mxu2 }
 0x146   : > { %v1617_v17 = vpop.f32.mrf.mxu1  ;;  %v2032_v21 = vpack.c.bf16 %v1904_v14, %v1904_v14  ;;  %2224 = vst.msk [vmem:[%s3540_s27 + $0x140] sm:$0xf] %vm2143_vm3, %v2095_v20  ;;  %v1441_v39 = vadd.f32 %v3527_v2, %v1440_v47  ;;  %v2829_v47 = vld [vmem:[%s3391_s18 + $0x358] sm:$0xf0] }
 0x147   : > { %v1283_v23 = vpop.f32.mrf.mxu0 }
 0x148   : > { %2161 = vst.msk [vmem:[%s3540_s27 + $0x44] sm:$0xf] %vm2143_vm3, %v2032_v21  ;;  %v1284_v25 = vadd.f32 %v3527_v2, %v1283_v23  ;;  %v1770_v28 = vadd.f32 %v3717_v61, %v1441_v39  ;;  %v3123_v21 = vld [vmem:[%s3391_s18 + $0x354] sm:$0xf]  ;;  %v2568_v39 = vor.u32 %v3057_v18, %v2565_v0  ;;  %v2555_v23 = vld [vmem:[%s3391_s18 + $0x130] sm:$0xf] }
 0x149   : > { %2967 = vmatmul.msk.bf16.gmra.mxu1 %vm1029_vm2, %v2552_v55  ;;  %3000 = vmatmul.msk.bf16.gmra.mxu3 %vm1029_vm2, %v2816_v16 }
 0x14a   : > { %v1613_v30 = vadd.f32 %v1612_v40, %v1284_v25  ;;  %1322 = vmatmul.bf16.gmra.mxu0 %v2540_v43  ;;  %v1968_v31 = vmax.f32 %v1770_v28, 0.0  ;;  %1482 = vmatmul.bf16.gmra.mxu2 %v2796_v24  ;;  %v3056_v24 = vld [vmem:[%s3391_s18 + $0x134] sm:$0xf0] }
 0x14c   : > { %v3786_v32 = vpop.f32.mrf.mxu3  ;;  %v1905_v58 = vmax.f32 %v1613_v30, 0.0  ;;  %v2096_v29 = vpack.c.bf16 %v1968_v31, %v1968_v31  ;;  %v2811_v31 = vld [vmem:[%s3391_s18 + $0x330] sm:$0xf] }
 0x14d   : > { %v1443_v36 = vpop.f32.mrf.mxu2 }
 0x14e   : > { %v1619_v51 = vpop.f32.mrf.mxu1  ;;  %v2033_v35 = vpack.c.bf16 %v1905_v58, %v1905_v58  ;;  %2225 = vst.msk [vmem:[%s3540_s27 + $0x144] sm:$0xf] %vm2143_vm3, %v2096_v29  ;;  %v1444_v61 = vadd.f32 %v3527_v2, %v1443_v36  ;;  %v3120_v58 = vld [vmem:[%s3391_s18 + $0x334] sm:$0xf0]  ;;  %v2832_v29 = vor.u32 %v3123_v21, %v2829_v47 }
 0x14f   : > { %v1285_v38 = vpop.f32.mrf.mxu0 }
 0x150   : > { %2162 = vst.msk [vmem:[%s3540_s27 + $0x48] sm:$0xf] %vm2143_vm3, %v2033_v35  ;;  %v1286_v40 = vadd.f32 %v3527_v2, %v1285_v38  ;;  %v1773_v41 = vadd.f32 %v3730_v19, %v1444_v61  ;;  %v2548_v19 = vor.u32 %v3054_v49, %v2547_v48 }
 0x152   : > { %v1615_v45 = vadd.f32 %v1614_v13, %v1286_v40  ;;  %v1969_v3 = vmax.f32 %v1773_v41, 0.0  ;;  %v2812_v40 = vor.u32 %v3120_v58, %v2811_v31  ;;  %v3061_v31 = vld [vmem:[%s3391_s18 + $0x164] sm:$0xf]  ;;  %v2581_v58 = vld [vmem:[%s3391_s18 + $0x168] sm:$0xf0] }
 0x154   : > { %v3801_v50 = vpop.f32.mrf.mxu3  ;;  %v1906_v52 = vmax.f32 %v1615_v45, 0.0  ;;  %v2097_v59 = vpack.c.bf16 %v1969_v3, %v1969_v3 }
 0x155   : > { %v1445_v22 = vpop.f32.mrf.mxu2 }
 0x156   : > { %v1622_v54 = vpop.f32.mrf.mxu1  ;;  %v2034_v60 = vpack.c.bf16 %v1906_v52, %v1906_v52  ;;  %2226 = vst.msk [vmem:[%s3540_s27 + $0x148] sm:$0xf] %vm2143_vm3, %v2097_v59  ;;  %v1446_v13 = vadd.f32 %v3527_v2, %v1445_v22  ;;  %v2837_v22 = vld [vmem:[%s3391_s18 + $0x368] sm:$0xf0] }
 0x157   : > { %v1288_v62 = vpop.f32.mrf.mxu0 }
 0x158   : > { %2163 = vst.msk [vmem:[%s3540_s27 + $0x4c] sm:$0xf] %vm2143_vm3, %v2034_v60  ;;  %v1289_v1 = vadd.f32 %v3527_v2, %v1288_v62  ;;  %v1775_v4 = vadd.f32 %v3745_v37, %v1446_v13  ;;  %v3125_v60 = vld [vmem:[%s3391_s18 + $0x364] sm:$0xf]  ;;  %v2576_v13 = vor.u32 %v3059_v56, %v2573_v26  ;;  %v2563_v62 = vld [vmem:[%s3391_s18 + $0x140] sm:$0xf] }
 0x159   : > { %2968 = vmatmul.msk.bf16.gmra.mxu1 %vm1029_vm2, %v2560_v11  ;;  %3001 = vmatmul.msk.bf16.gmra.mxu3 %vm1029_vm2, %v2824_v53 }
 0x15a   : > { %v1618_v5 = vadd.f32 %v1617_v17, %v1289_v1  ;;  %1327 = vmatmul.bf16.gmra.mxu0 %v2548_v19  ;;  %v1970_v6 = vmax.f32 %v1775_v4, 0.0  ;;  %1487 = vmatmul.bf16.gmra.mxu2 %v2804_v63  ;;  %v3058_v63 = vld [vmem:[%s3391_s18 + $0x144] sm:$0xf0] }
 0x15c   : > { %v3814_v7 = vpop.f32.mrf.mxu3  ;;  %v1907_v34 = vmax.f32 %v1618_v5, 0.0  ;;  %v2098_v55 = vpack.c.bf16 %v1970_v6, %v1970_v6  ;;  %v2819_v6 = vld [vmem:[%s3391_s18 + $0x340] sm:$0xf] }
 0x15d   : > { %v1448_v10 = vpop.f32.mrf.mxu2 }
 0x15e   : > { %v1624_v27 = vpop.f32.mrf.mxu1  ;;  %v2035_v9 = vpack.c.bf16 %v1907_v34, %v1907_v34  ;;  %2227 = vst.msk [vmem:[%s3540_s27 + $0x14c] sm:$0xf] %vm2143_vm3, %v2098_v55  ;;  %v1449_v37 = vadd.f32 %v3527_v2, %v1448_v10  ;;  %v3122_v34 = vld [vmem:[%s3391_s18 + $0x344] sm:$0xf0] }
 0x15f   : > { %v1290_v14 = vpop.f32.mrf.mxu0 }
 0x160   : > { %2164 = vst.msk [vmem:[%s3540_s27 + $0x50] sm:$0xf] %vm2143_vm3, %v2035_v9  ;;  %v1291_v17 = vadd.f32 %v3527_v2, %v1290_v14  ;;  %v1778_v16 = vadd.f32 %v3758_v57, %v1449_v37  ;;  %v2556_v57 = vor.u32 %v3056_v24, %v2555_v23 }
 0x162   : > { %v1620_v20 = vadd.f32 %v1619_v51, %v1291_v17  ;;  %v1971_v43 = vmax.f32 %v1778_v16, 0.0  ;;  %v2820_v17 = vor.u32 %v3122_v34, %v2819_v6  ;;  %v3063_v6 = vld [vmem:[%s3391_s18 + $0x174] sm:$0xf]  ;;  %v2589_v34 = vld [vmem:[%s3391_s18 + $0x178] sm:$0xf0] }
 0x164   : > { %v3829_v25 = vpop.f32.mrf.mxu3  ;;  %v1908_v28 = vmax.f32 %v1620_v20, 0.0  ;;  %v2099_v35 = vpack.c.bf16 %v1971_v43, %v1971_v43 }
 0x165   : > { %v1450_v61 = vpop.f32.mrf.mxu2 }
 0x166   : > { %v1627_v30 = vpop.f32.mrf.mxu1  ;;  %v2036_v36 = vpack.c.bf16 %v1908_v28, %v1908_v28  ;;  %2228 = vst.msk [vmem:[%s3540_s27 + $0x150] sm:$0xf] %vm2143_vm3, %v2099_v35  ;;  %v1451_v51 = vadd.f32 %v3527_v2, %v1450_v61  ;;  %v2845_v61 = vld [vmem:[%s3391_s18 + $0x378] sm:$0xf0] }
 0x167   : > { %v1293_v38 = vpop.f32.mrf.mxu0 }
 0x168   : > { %2165 = vst.msk [vmem:[%s3540_s27 + $0x54] sm:$0xf] %vm2143_vm3, %v2036_v36  ;;  %v1294_v42 = vadd.f32 %v3527_v2, %v1293_v38  ;;  %v1780_v44 = vadd.f32 %v3773_v12, %v1451_v51  ;;  %v3127_v36 = vld [vmem:[%s3391_s18 + $0x374] sm:$0xf]  ;;  %v2584_v51 = vor.u32 %v3061_v31, %v2581_v58  ;;  %v2571_v38 = vld [vmem:[%s3391_s18 + $0x150] sm:$0xf] }
 0x169   : > { %2969 = vmatmul.msk.bf16.gmra.mxu1 %vm1029_vm2, %v2568_v39  ;;  %3002 = vmatmul.msk.bf16.gmra.mxu3 %vm1029_vm2, %v2832_v29 }
 0x16a   : > { %v1623_v41 = vadd.f32 %v1622_v54, %v1294_v42  ;;  %1332 = vmatmul.bf16.gmra.mxu0 %v2556_v57  ;;  %v1972_v45 = vmax.f32 %v1780_v44, 0.0  ;;  %1492 = vmatmul.bf16.gmra.mxu2 %v2812_v40  ;;  %v3060_v40 = vld [vmem:[%s3391_s18 + $0x154] sm:$0xf0] }
 0x16c   : > { %v3842_v46 = vpop.f32.mrf.mxu3  ;;  %v1909_v8 = vmax.f32 %v1623_v41, 0.0  ;;  %v2100_v11 = vpack.c.bf16 %v1972_v45, %v1972_v45  ;;  %v2827_v45 = vld [vmem:[%s3391_s18 + $0x350] sm:$0xf] }
 0x16d   : > { %v1453_v49 = vpop.f32.mrf.mxu2 }
 0x16e   : > { %v1629_v3 = vpop.f32.mrf.mxu1  ;;  %v2037_v48 = vpack.c.bf16 %v1909_v8, %v1909_v8  ;;  %2229 = vst.msk [vmem:[%s3540_s27 + $0x154] sm:$0xf] %vm2143_vm3, %v2100_v11  ;;  %v1454_v12 = vadd.f32 %v3527_v2, %v1453_v49  ;;  %v3124_v8 = vld [vmem:[%s3391_s18 + $0x354] sm:$0xf0]  ;;  %v2848_v11 = vor.u32 %v3127_v36, %v2845_v61 }
 0x16f   : > { %v1295_v52 = vpop.f32.mrf.mxu0 }
 0x170   : > { %2166 = vst.msk [vmem:[%s3540_s27 + $0x58] sm:$0xf] %vm2143_vm3, %v2037_v48  ;;  %v1296_v54 = vadd.f32 %v3527_v2, %v1295_v52  ;;  %v1783_v53 = vadd.f32 %v3786_v32, %v1454_v12  ;;  %v2840_v2 = vor.u32 %v3125_v60, %v2837_v22  ;;  %v2564_v32 = vor.u32 %v3058_v63, %v2563_v62 }
 0x172   : > { %v1625_v59 = vadd.f32 %v1624_v27, %v1296_v54  ;;  %v1973_v19 = vmax.f32 %v1783_v53, 0.0  ;;  %v3866_v27 = vld [vmem:[%s4320_s2] ss:$0 sm:$0xff]  ;;  %v2828_v54 = vor.u32 %v3124_v8, %v2827_v45  ;;  %v3065_v45 = vld [vmem:[%s3391_s18 + $0x184] sm:$0xf] }
 0x173   : > { %v2597_v8 = vld [vmem:[%s3391_s18 + $0x188] sm:$0xf0] }
 0x174   : > { %v3857_v1 = vpop.f32.mrf.mxu3  ;;  %v1910_v4 = vmax.f32 %v1625_v59, 0.0  ;;  %v2101_v55 = vpack.c.bf16 %v1973_v19, %v1973_v19 }
 0x175   : > { %v1455_v10 = vpop.f32.mrf.mxu2 }
 0x176   : > { %v1632_v5 = vpop.f32.mrf.mxu1  ;;  %v2038_v9 = vpack.c.bf16 %v1910_v4, %v1910_v4  ;;  %2230 = vst.msk [vmem:[%s3540_s27 + $0x158] sm:$0xf] %vm2143_vm3, %v2101_v55  ;;  %v1456_v37 = vadd.f32 %v3866_v27, %v1455_v10  ;;  %v2853_v10 = vld [vmem:[%s3391_s18 + $0x388] sm:$0xf0] }
 0x177   : > { %v1298_v14 = vpop.f32.mrf.mxu0 }
 0x178   : > { %2167 = vst.msk [vmem:[%s3540_s27 + $0x5c] sm:$0xf] %vm2143_vm3, %v2038_v9  ;;  %v1299_v18 = vadd.f32 %v3866_v27, %v1298_v14  ;;  %v1785_v0 = vadd.f32 %v3801_v50, %v1456_v37  ;;  %v3129_v9 = vld [vmem:[%s3391_s18 + $0x384] sm:$0xf]  ;;  %v2592_v37 = vor.u32 %v3063_v6, %v2589_v34  ;;  %v2579_v14 = vld [vmem:[%s3391_s18 + $0x160] sm:$0xf] }
 0x179   : > { %2970 = vmatmul.msk.bf16.gmra.mxu1 %vm1029_vm2, %v2576_v13  ;;  %3003 = vmatmul.msk.bf16.gmra.mxu3 %vm1029_vm2, %v2840_v2 }
 0x17a   : > { %v1628_v16 = vadd.f32 %v1627_v30, %v1299_v18  ;;  %1337 = vmatmul.bf16.gmra.mxu0 %v2564_v32  ;;  %v1974_v20 = vmax.f32 %v1785_v0, 0.0  ;;  %1497 = vmatmul.bf16.gmra.mxu2 %v2820_v17  ;;  %v3062_v17 = vld [vmem:[%s3391_s18 + $0x164] sm:$0xf0] }
 0x17c   : > { %v3875_v21 = vpop.f32.mrf.mxu3  ;;  %v1911_v47 = vmax.f32 %v1628_v16, 0.0  ;;  %v2102_v39 = vpack.c.bf16 %v1974_v20, %v1974_v20  ;;  %v2835_v20 = vld [vmem:[%s3391_s18 + $0x360] sm:$0xf] }
 0x17d   : > { %v1458_v24 = vpop.f32.mrf.mxu2 }
 0x17e   : > { %v1634_v43 = vpop.f32.mrf.mxu1  ;;  %v2039_v23 = vpack.c.bf16 %v1911_v47, %v1911_v47  ;;  %2231 = vst.msk [vmem:[%s3540_s27 + $0x15c] sm:$0xf] %vm2143_vm3, %v2102_v39  ;;  %v1459_v50 = vadd.f32 %v3866_v27, %v1458_v24  ;;  %v3126_v47 = vld [vmem:[%s3391_s18 + $0x364] sm:$0xf0]  ;;  %v2856_v39 = vor.u32 %v3129_v9, %v2853_v10 }
 0x17f   : > { %v1300_v28 = vpop.f32.mrf.mxu0 }
 0x180   : > { %2168 = vst.msk [vmem:[%s3540_s27 + $0x60] sm:$0xf] %vm2143_vm3, %v2039_v23  ;;  %v1301_v30 = vadd.f32 %v3866_v27, %v1300_v28  ;;  %v1788_v29 = vadd.f32 %v3814_v7, %v1459_v50  ;;  %v2572_v7 = vor.u32 %v3060_v40, %v2571_v38 }
 0x182   : > { %v1630_v35 = vadd.f32 %v1629_v3, %v1301_v30  ;;  %v1975_v57 = vmax.f32 %v1788_v29, 0.0  ;;  %v2836_v30 = vor.u32 %v3126_v47, %v2835_v20  ;;  %v3067_v20 = vld [vmem:[%s3391_s18 + $0x194] sm:$0xf]  ;;  %v2605_v47 = vld [vmem:[%s3391_s18 + $0x198] sm:$0xf0] }
 0x184   : > { %v3890_v42 = vpop.f32.mrf.mxu3  ;;  %v1912_v44 = vmax.f32 %v1630_v35, 0.0  ;;  %v2103_v48 = vpack.c.bf16 %v1975_v57, %v1975_v57 }
 0x185   : > { %v1460_v12 = vpop.f32.mrf.mxu2 }
 0x186   : > { %v1637_v41 = vpop.f32.mrf.mxu1  ;;  %v2040_v49 = vpack.c.bf16 %v1912_v44, %v1912_v44  ;;  %2232 = vst.msk [vmem:[%s3540_s27 + $0x160] sm:$0xf] %vm2143_vm3, %v2103_v48  ;;  %v1461_v3 = vadd.f32 %v3866_v27, %v1460_v12  ;;  %v2861_v12 = vld [vmem:[%s3391_s18 + $0x398] sm:$0xf0] }
 0x187   : > { %v1303_v52 = vpop.f32.mrf.mxu0 }
 0x188   : > { %2169 = vst.msk [vmem:[%s3540_s27 + $0x64] sm:$0xf] %vm2143_vm3, %v2040_v49  ;;  %v1304_v56 = vadd.f32 %v3866_v27, %v1303_v52  ;;  %v1790_v26 = vadd.f32 %v3829_v25, %v1461_v3  ;;  %v3131_v49 = vld [vmem:[%s3391_s18 + $0x394] sm:$0xf]  ;;  %v2600_v3 = vor.u32 %v3065_v45, %v2597_v8  ;;  %v2587_v52 = vld [vmem:[%s3391_s18 + $0x170] sm:$0xf] }
 0x189   : > { %2971 = vmatmul.msk.bf16.gmra.mxu1 %vm1029_vm2, %v2584_v51  ;;  %3004 = vmatmul.msk.bf16.gmra.mxu3 %vm1029_vm2, %v2848_v11 }
 0x18a   : > { %v1633_v53 = vadd.f32 %v1632_v5, %v1304_v56  ;;  %1342 = vmatmul.bf16.gmra.mxu0 %v2572_v7  ;;  %v1976_v59 = vmax.f32 %v1790_v26, 0.0  ;;  %1502 = vmatmul.bf16.gmra.mxu2 %v2828_v54  ;;  %v3064_v54 = vld [vmem:[%s3391_s18 + $0x174] sm:$0xf0] }
 0x18c   : > { %v3903_v60 = vpop.f32.mrf.mxu3  ;;  %v1913_v22 = vmax.f32 %v1633_v53, 0.0  ;;  %v2104_v13 = vpack.c.bf16 %v1976_v59, %v1976_v59  ;;  %v2843_v59 = vld [vmem:[%s3391_s18 + $0x370] sm:$0xf] }
 0x18d   : > { %v1463_v63 = vpop.f32.mrf.mxu2 }
 0x18e   : > { %v1639_v19 = vpop.f32.mrf.mxu1  ;;  %v2041_v62 = vpack.c.bf16 %v1913_v22, %v1913_v22  ;;  %2233 = vst.msk [vmem:[%s3540_s27 + $0x164] sm:$0xf] %vm2143_vm3, %v2104_v13  ;;  %v1464_v25 = vadd.f32 %v3866_v27, %v1463_v63  ;;  %v3128_v22 = vld [vmem:[%s3391_s18 + $0x374] sm:$0xf0]  ;;  %v2864_v13 = vor.u32 %v3131_v49, %v2861_v12 }
 0x18f   : > { %v1305_v4 = vpop.f32.mrf.mxu0 }
 0x190   : > { %2170 = vst.msk [vmem:[%s3540_s27 + $0x68] sm:$0xf] %vm2143_vm3, %v2041_v62  ;;  %v1306_v5 = vadd.f32 %v3866_v27, %v1305_v4  ;;  %v1793_v2 = vadd.f32 %v3842_v46, %v1464_v25  ;;  %v2580_v46 = vor.u32 %v3062_v17, %v2579_v14 }
 0x192   : > { %v1635_v55 = vadd.f32 %v1634_v43, %v1306_v5  ;;  %v1977_v32 = vmax.f32 %v1793_v2, 0.0  ;;  %v2844_v5 = vor.u32 %v3128_v22, %v2843_v59  ;;  %v3069_v59 = vld [vmem:[%s3391_s18 + $0x1a4] sm:$0xf]  ;;  %v2613_v22 = vld [vmem:[%s3391_s18 + $0x1a8] sm:$0xf0] }
 0x194   : > { %v3918_v18 = vpop.f32.mrf.mxu3  ;;  %v1914_v0 = vmax.f32 %v1635_v55, 0.0  ;;  %v2105_v23 = vpack.c.bf16 %v1977_v32, %v1977_v32 }
 0x195   : > { %v1465_v50 = vpop.f32.mrf.mxu2 }
 0x196   : > { %v1642_v16 = vpop.f32.mrf.mxu1  ;;  %v2042_v24 = vpack.c.bf16 %v1914_v0, %v1914_v0  ;;  %2234 = vst.msk [vmem:[%s3540_s27 + $0x168] sm:$0xf] %vm2143_vm3, %v2105_v23  ;;  %v1466_v43 = vadd.f32 %v3866_v27, %v1465_v50  ;;  %v2869_v50 = vld [vmem:[%s3391_s18 + $0x3a8] sm:$0xf0] }
 0x197   : > { %v1308_v28 = vpop.f32.mrf.mxu0 }
 0x198   : > { %2171 = vst.msk [vmem:[%s3540_s27 + $0x6c] sm:$0xf] %vm2143_vm3, %v2042_v24  ;;  %v1309_v31 = vadd.f32 %v3866_v27, %v1308_v28  ;;  %v1795_v58 = vadd.f32 %v3857_v1, %v1466_v43  ;;  %v3133_v24 = vld [vmem:[%s3391_s18 + $0x3a4] sm:$0xf]  ;;  %v2608_v43 = vor.u32 %v3067_v20, %v2605_v47  ;;  %v2595_v28 = vld [vmem:[%s3391_s18 + $0x180] sm:$0xf] }
 0x199   : > { %2972 = vmatmul.msk.bf16.gmra.mxu1 %vm1029_vm2, %v2592_v37  ;;  %3005 = vmatmul.msk.bf16.gmra.mxu3 %vm1029_vm2, %v2856_v39 }
 0x19a   : > { %v1638_v29 = vadd.f32 %v1637_v41, %v1309_v31  ;;  %1347 = vmatmul.bf16.gmra.mxu0 %v2580_v46  ;;  %v1978_v35 = vmax.f32 %v1795_v58, 0.0  ;;  %1507 = vmatmul.bf16.gmra.mxu2 %v2836_v30  ;;  %v3066_v30 = vld [vmem:[%s3391_s18 + $0x184] sm:$0xf0] }
 0x19c   : > { %v3931_v36 = vpop.f32.mrf.mxu3  ;;  %v1915_v61 = vmax.f32 %v1638_v29, 0.0  ;;  %v2106_v51 = vpack.c.bf16 %v1978_v35, %v1978_v35  ;;  %v2851_v35 = vld [vmem:[%s3391_s18 + $0x380] sm:$0xf] }
 0x19d   : > { %v1468_v40 = vpop.f32.mrf.mxu2 }
 0x19e   : > { %v1644_v57 = vpop.f32.mrf.mxu1  ;;  %v2043_v38 = vpack.c.bf16 %v1915_v61, %v1915_v61  ;;  %2235 = vst.msk [vmem:[%s3540_s27 + $0x16c] sm:$0xf] %vm2143_vm3, %v2106_v51  ;;  %v1469_v1 = vadd.f32 %v3866_v27, %v1468_v40  ;;  %v3130_v61 = vld [vmem:[%s3391_s18 + $0x384] sm:$0xf0]  ;;  %v2872_v51 = vor.u32 %v3133_v24, %v2869_v50 }
 0x19f   : > { %v1310_v44 = vpop.f32.mrf.mxu0 }
 0x1a0   : > { %2172 = vst.msk [vmem:[%s3540_s27 + $0x70] sm:$0xf] %vm2143_vm3, %v2043_v38  ;;  %v1311_v41 = vadd.f32 %v3866_v27, %v1310_v44  ;;  %v1798_v11 = vadd.f32 %v3875_v21, %v1469_v1  ;;  %v2588_v21 = vor.u32 %v3064_v54, %v2587_v52 }
 0x1a2   : > { %v1640_v48 = vadd.f32 %v1639_v19, %v1311_v41  ;;  %v1979_v7 = vmax.f32 %v1798_v11, 0.0  ;;  %v2852_v41 = vor.u32 %v3130_v61, %v2851_v35  ;;  %v3071_v35 = vld [vmem:[%s3391_s18 + $0x1b4] sm:$0xf]  ;;  %v2621_v61 = vld [vmem:[%s3391_s18 + $0x1b8] sm:$0xf0] }
 0x1a4   : > { %v3946_v56 = vpop.f32.mrf.mxu3  ;;  %v1916_v26 = vmax.f32 %v1640_v48, 0.0  ;;  %v2107_v62 = vpack.c.bf16 %v1979_v7, %v1979_v7 }
 0x1a5   : > { %v1470_v25 = vpop.f32.mrf.mxu2 }
 0x1a6   : > { %v1647_v53 = vpop.f32.mrf.mxu1  ;;  %v2044_v63 = vpack.c.bf16 %v1916_v26, %v1916_v26  ;;  %2236 = vst.msk [vmem:[%s3540_s27 + $0x170] sm:$0xf] %vm2143_vm3, %v2107_v62  ;;  %v1471_v19 = vadd.f32 %v3866_v27, %v1470_v25  ;;  %v2877_v25 = vld [vmem:[%s3391_s18 + $0x3b8] sm:$0xf0] }
 0x1a7   : > { %v1313_v4 = vpop.f32.mrf.mxu0 }
 0x1a8   : > { %2173 = vst.msk [vmem:[%s3540_s27 + $0x74] sm:$0xf] %vm2143_vm3, %v2044_v63  ;;  %v1314_v6 = vadd.f32 %v3866_v27, %v1313_v4  ;;  %v1800_v34 = vadd.f32 %v3890_v42, %v1471_v19  ;;  %v3135_v63 = vld [vmem:[%s3391_s18 + $0x3b4] sm:$0xf]  ;;  %v2616_v19 = vor.u32 %v3069_v59, %v2613_v22  ;;  %v2603_v4 = vld [vmem:[%s3391_s18 + $0x190] sm:$0xf] }
 0x1a9   : > { %2973 = vmatmul.msk.bf16.gmra.mxu1 %vm1029_vm2, %v2600_v3  ;;  %3006 = vmatmul.msk.bf16.gmra.mxu3 %vm1029_vm2, %v2864_v13 }
 0x1aa   : > { %v1643_v2 = vadd.f32 %v1642_v16, %v1314_v6  ;;  %1352 = vmatmul.bf16.gmra.mxu0 %v2588_v21  ;;  %v1980_v55 = vmax.f32 %v1800_v34, 0.0  ;;  %1512 = vmatmul.bf16.gmra.mxu2 %v2844_v5  ;;  %v3068_v5 = vld [vmem:[%s3391_s18 + $0x194] sm:$0xf0] }
 0x1ac   : > { %v3959_v9 = vpop.f32.mrf.mxu3  ;;  %v1917_v10 = vmax.f32 %v1643_v2, 0.0  ;;  %v2108_v37 = vpack.c.bf16 %v1980_v55, %v1980_v55  ;;  %v2859_v55 = vld [vmem:[%s3391_s18 + $0x390] sm:$0xf] }
 0x1ad   : > { %v1473_v17 = vpop.f32.mrf.mxu2 }
 0x1ae   : > { %v1649_v32 = vpop.f32.mrf.mxu1  ;;  %v2045_v14 = vpack.c.bf16 %v1917_v10, %v1917_v10  ;;  %2237 = vst.msk [vmem:[%s3540_s27 + $0x174] sm:$0xf] %vm2143_vm3, %v2108_v37  ;;  %v1474_v42 = vadd.f32 %v3866_v27, %v1473_v17  ;;  %v3132_v10 = vld [vmem:[%s3391_s18 + $0x394] sm:$0xf0]  ;;  %v2880_v37 = vor.u32 %v3135_v63, %v2877_v25 }
 0x1af   : > { %v1315_v0 = vpop.f32.mrf.mxu0 }
 0x1b0   : > { %2174 = vst.msk [vmem:[%s3540_s27 + $0x78] sm:$0xf] %vm2143_vm3, %v2045_v14  ;;  %v1316_v16 = vadd.f32 %v3866_v27, %v1315_v0  ;;  %v1803_v39 = vadd.f32 %v3903_v60, %v1474_v42  ;;  %v2596_v60 = vor.u32 %v3066_v30, %v2595_v28 }
 0x1b2   : > { %v1645_v23 = vadd.f32 %v1644_v57, %v1316_v16  ;;  %v1981_v46 = vmax.f32 %v1803_v39, 0.0  ;;  %v2860_v16 = vor.u32 %v3132_v10, %v2859_v55  ;;  %v3073_v55 = vld [vmem:[%s3391_s18 + $0x1c4] sm:$0xf]  ;;  %v2629_v10 = vld [vmem:[%s3391_s18 + $0x1c8] sm:$0xf0] }
 0x1b4   : > { %v3974_v31 = vpop.f32.mrf.mxu3  ;;  %v1918_v58 = vmax.f32 %v1645_v23, 0.0  ;;  %v2109_v38 = vpack.c.bf16 %v1981_v46, %v1981_v46 }
 0x1b5   : > { %v1475_v1 = vpop.f32.mrf.mxu2 }
 0x1b6   : > { %v1652_v29 = vpop.f32.mrf.mxu1  ;;  %v2046_v40 = vpack.c.bf16 %v1918_v58, %v1918_v58  ;;  %2238 = vst.msk [vmem:[%s3540_s27 + $0x178] sm:$0xf] %vm2143_vm3, %v2109_v38  ;;  %v1476_v57 = vadd.f32 %v3866_v27, %v1475_v1  ;;  %v2885_v1 = vld [vmem:[%s3391_s18 + $0x3c8] sm:$0xf0] }
 0x1b7   : > { %v1318_v44 = vpop.f32.mrf.mxu0 }
 0x1b8   : > { %2175 = vst.msk [vmem:[%s3540_s27 + $0x7c] sm:$0xf] %vm2143_vm3, %v2046_v40  ;;  %v1319_v45 = vadd.f32 %v3866_v27, %v1318_v44  ;;  %v1805_v8 = vadd.f32 %v3918_v18, %v1476_v57  ;;  %v3137_v40 = vld [vmem:[%s3391_s18 + $0x3c4] sm:$0xf]  ;;  %v2624_v57 = vor.u32 %v3071_v35, %v2621_v61  ;;  %v2611_v44 = vld [vmem:[%s3391_s18 + $0x1a0] sm:$0xf] }
 0x1b9   : > { %2974 = vmatmul.msk.bf16.gmra.mxu1 %vm1029_vm2, %v2608_v43  ;;  %3007 = vmatmul.msk.bf16.gmra.mxu3 %vm1029_vm2, %v2872_v51 }
 0x1ba   : > { %v1648_v11 = vadd.f32 %v1647_v53, %v1319_v45  ;;  %1357 = vmatmul.bf16.gmra.mxu0 %v2596_v60  ;;  %v1982_v48 = vmax.f32 %v1805_v8, 0.0  ;;  %1517 = vmatmul.bf16.gmra.mxu2 %v2852_v41  ;;  %v3070_v41 = vld [vmem:[%s3391_s18 + $0x1a4] sm:$0xf0] }
 0x1bc   : > { %v3987_v49 = vpop.f32.mrf.mxu3  ;;  %v1919_v12 = vmax.f32 %v1648_v11, 0.0  ;;  %v2110_v3 = vpack.c.bf16 %v1982_v48, %v1982_v48  ;;  %v2867_v48 = vld [vmem:[%s3391_s18 + $0x3a0] sm:$0xf] }
 0x1bd   : > { %v1478_v54 = vpop.f32.mrf.mxu2 }
 0x1be   : > { %v1654_v7 = vpop.f32.mrf.mxu1  ;;  %v2047_v52 = vpack.c.bf16 %v1919_v12, %v1919_v12  ;;  %2239 = vst.msk [vmem:[%s3540_s27 + $0x17c] sm:$0xf] %vm2143_vm3, %v2110_v3  ;;  %v1479_v18 = vadd.f32 %v3866_v27, %v1478_v54  ;;  %v3134_v12 = vld [vmem:[%s3391_s18 + $0x3a4] sm:$0xf0]  ;;  %v2888_v3 = vor.u32 %v3137_v40, %v2885_v1 }
 0x1bf   : > { %v1320_v26 = vpop.f32.mrf.mxu0 }
 0x1c0   : > { %2176 = vst.msk [vmem:[%s3540_s27 + $0x80] sm:$0xf] %vm2143_vm3, %v2047_v52  ;;  %v1321_v53 = vadd.f32 %v3866_v27, %v1320_v26  ;;  %v1808_v13 = vadd.f32 %v3931_v36, %v1479_v18  ;;  %v2604_v36 = vor.u32 %v3068_v5, %v2603_v4 }
 0x1c2   : > { %v1650_v62 = vadd.f32 %v1649_v32, %v1321_v53  ;;  %v1983_v21 = vmax.f32 %v1808_v13, 0.0  ;;  %v2868_v53 = vor.u32 %v3134_v12, %v2867_v48  ;;  %v3075_v48 = vld [vmem:[%s3391_s18 + $0x1d4] sm:$0xf]  ;;  %v2637_v12 = vld [vmem:[%s3391_s18 + $0x1d8] sm:$0xf0] }
 0x1c4   : > { %v4002_v6 = vpop.f32.mrf.mxu3  ;;  %v1920_v34 = vmax.f32 %v1650_v62, 0.0  ;;  %v2111_v14 = vpack.c.bf16 %v1983_v21, %v1983_v21 }
 0x1c5   : > { %v1480_v42 = vpop.f32.mrf.mxu2 }
 0x1c6   : > { %v1657_v2 = vpop.f32.mrf.mxu1  ;;  %v2048_v17 = vpack.c.bf16 %v1920_v34, %v1920_v34  ;;  %2240 = vst.msk [vmem:[%s3540_s27 + $0x180] sm:$0xf] %vm2143_vm3, %v2111_v14  ;;  %v1481_v32 = vadd.f32 %v3866_v27, %v1480_v42  ;;  %v2893_v42 = vld [vmem:[%s3391_s18 + $0x3d8] sm:$0xf0] }
 0x1c7   : > { %v1323_v0 = vpop.f32.mrf.mxu0 }
 0x1c8   : > { %2177 = vst.msk [vmem:[%s3540_s27 + $0x84] sm:$0xf] %vm2143_vm3, %v2048_v17  ;;  %v1324_v20 = vadd.f32 %v3866_v27, %v1323_v0  ;;  %v1810_v47 = vadd.f32 %v3946_v56, %v1481_v32  ;;  %v3139_v17 = vld [vmem:[%s3391_s18 + $0x3d4] sm:$0xf]  ;;  %v2632_v32 = vor.u32 %v3073_v55, %v2629_v10  ;;  %v2619_v0 = vld [vmem:[%s3391_s18 + $0x1b0] sm:$0xf] }
 0x1c9   : > { %2975 = vmatmul.msk.bf16.gmra.mxu1 %vm1029_vm2, %v2616_v19  ;;  %3008 = vmatmul.msk.bf16.gmra.mxu3 %vm1029_vm2, %v2880_v37 }
 0x1ca   : > { %v1653_v39 = vadd.f32 %v1652_v29, %v1324_v20  ;;  %1362 = vmatmul.bf16.gmra.mxu0 %v2604_v36  ;;  %v1984_v23 = vmax.f32 %v1810_v47, 0.0  ;;  %1522 = vmatmul.bf16.gmra.mxu2 %v2860_v16  ;;  %v3072_v16 = vld [vmem:[%s3391_s18 + $0x1b4] sm:$0xf0] }
 0x1cc   : > { %v4015_v24 = vpop.f32.mrf.mxu3  ;;  %v1921_v50 = vmax.f32 %v1653_v39, 0.0  ;;  %v2112_v43 = vpack.c.bf16 %v1984_v23, %v1984_v23  ;;  %v2875_v23 = vld [vmem:[%s3391_s18 + $0x3b0] sm:$0xf] }
 0x1cd   : > { %v1483_v30 = vpop.f32.mrf.mxu2 }
 0x1ce   : > { %v1659_v46 = vpop.f32.mrf.mxu1  ;;  %v2049_v28 = vpack.c.bf16 %v1921_v50, %v1921_v50  ;;  %2241 = vst.msk [vmem:[%s3540_s27 + $0x184] sm:$0xf] %vm2143_vm3, %v2112_v43  ;;  %v1484_v56 = vadd.f32 %v3866_v27, %v1483_v30  ;;  %v3136_v50 = vld [vmem:[%s3391_s18 + $0x3b4] sm:$0xf0]  ;;  %v2896_v43 = vor.u32 %v3139_v17, %v2893_v42 }
 0x1cf   : > { %v1325_v58 = vpop.f32.mrf.mxu0 }
 0x1d0   : > { %2178 = vst.msk [vmem:[%s3540_s27 + $0x88] sm:$0xf] %vm2143_vm3, %v2049_v28  ;;  %v1326_v29 = vadd.f32 %v3866_v27, %v1325_v58  ;;  %v1813_v51 = vadd.f32 %v3959_v9, %v1484_v56  ;;  %v2612_v9 = vor.u32 %v3070_v41, %v2611_v44 }
 0x1d2   : > { %v1655_v38 = vadd.f32 %v1654_v7, %v1326_v29  ;;  %v1985_v60 = vmax.f32 %v1813_v51, 0.0  ;;  %v2876_v29 = vor.u32 %v3136_v50, %v2875_v23  ;;  %v3077_v23 = vld [vmem:[%s3391_s18 + $0x1e4] sm:$0xf]  ;;  %v2645_v50 = vld [vmem:[%s3391_s18 + $0x1e8] sm:$0xf0] }
 0x1d4   : > { %v4030_v45 = vpop.f32.mrf.mxu3  ;;  %v1922_v8 = vmax.f32 %v1655_v38, 0.0  ;;  %v2113_v52 = vpack.c.bf16 %v1985_v60, %v1985_v60 }
 0x1d5   : > { %v1485_v18 = vpop.f32.mrf.mxu2 }
 0x1d6   : > { %v1662_v11 = vpop.f32.mrf.mxu1  ;;  %v2050_v54 = vpack.c.bf16 %v1922_v8, %v1922_v8  ;;  %2242 = vst.msk [vmem:[%s3540_s27 + $0x188] sm:$0xf] %vm2143_vm3, %v2113_v52  ;;  %v1486_v7 = vadd.f32 %v3866_v27, %v1485_v18  ;;  %v2901_v18 = vld [vmem:[%s3391_s18 + $0x3e8] sm:$0xf0] }
 0x1d7   : > { %v1328_v26 = vpop.f32.mrf.mxu0 }
 0x1d8   : > { %2179 = vst.msk [vmem:[%s3540_s27 + $0x8c] sm:$0xf] %vm2143_vm3, %v2050_v54  ;;  %v1329_v59 = vadd.f32 %v3866_v27, %v1328_v26  ;;  %v1815_v22 = vadd.f32 %v3974_v31, %v1486_v7  ;;  %v3141_v54 = vld [vmem:[%s3391_s18 + $0x3e4] sm:$0xf]  ;;  %v2640_v7 = vor.u32 %v3075_v48, %v2637_v12  ;;  %v2627_v26 = vld [vmem:[%s3391_s18 + $0x1c0] sm:$0xf] }
 0x1d9   : > { %2976 = vmatmul.msk.bf16.gmra.mxu1 %vm1029_vm2, %v2624_v57  ;;  %3009 = vmatmul.msk.bf16.gmra.mxu3 %vm1029_vm2, %v2888_v3 }
 0x1da   : > { %v1658_v13 = vadd.f32 %v1657_v2, %v1329_v59  ;;  %1367 = vmatmul.bf16.gmra.mxu0 %v2612_v9  ;;  %v1986_v62 = vmax.f32 %v1815_v22, 0.0  ;;  %1527 = vmatmul.bf16.gmra.mxu2 %v2868_v53  ;;  %v3074_v53 = vld [vmem:[%s3391_s18 + $0x1c4] sm:$0xf0] }
 0x1dc   : > { %v4043_v63 = vpop.f32.mrf.mxu3  ;;  %v1923_v25 = vmax.f32 %v1658_v13, 0.0  ;;  %v2114_v19 = vpack.c.bf16 %v1986_v62, %v1986_v62  ;;  %v2883_v62 = vld [vmem:[%s3391_s18 + $0x3c0] sm:$0xf] }
 0x1dd   : > { %v1488_v5 = vpop.f32.mrf.mxu2 }
 0x1de   : > { %v1664_v21 = vpop.f32.mrf.mxu1  ;;  %v2051_v4 = vpack.c.bf16 %v1923_v25, %v1923_v25  ;;  %2243 = vst.msk [vmem:[%s3540_s27 + $0x18c] sm:$0xf] %vm2143_vm3, %v2114_v19  ;;  %v1489_v31 = vadd.f32 %v3866_v27, %v1488_v5  ;;  %v3138_v25 = vld [vmem:[%s3391_s18 + $0x3c4] sm:$0xf0]  ;;  %v2904_v19 = vor.u32 %v3141_v54, %v2901_v18 }
 0x1df   : > { %v1330_v34 = vpop.f32.mrf.mxu0 }
 0x1e0   : > { %2180 = vst.msk [vmem:[%s3540_s27 + $0x90] sm:$0xf] %vm2143_vm3, %v2051_v4  ;;  %v1331_v2 = vadd.f32 %v3866_v27, %v1330_v34  ;;  %v1818_v37 = vadd.f32 %v3987_v49, %v1489_v31  ;;  %v2620_v49 = vor.u32 %v3072_v16, %v2619_v0 }
 0x1e2   : > { %v1660_v14 = vadd.f32 %v1659_v46, %v1331_v2  ;;  %v1987_v36 = vmax.f32 %v1818_v37, 0.0  ;;  %v2884_v2 = vor.u32 %v3138_v25, %v2883_v62  ;;  %v3079_v62 = vld [vmem:[%s3391_s18 + $0x1f4] sm:$0xf]  ;;  %v2653_v25 = vld [vmem:[%s3391_s18 + $0x1f8] sm:$0xf0] }
 0x1e4   : > { %v4058_v20 = vpop.f32.mrf.mxu3  ;;  %v1924_v47 = vmax.f32 %v1660_v14, 0.0  ;;  %v2115_v28 = vpack.c.bf16 %v1987_v36, %v1987_v36 }
 0x1e5   : > { %v1490_v56 = vpop.f32.mrf.mxu2 }
 0x1e6   : > { %v1667_v39 = vpop.f32.mrf.mxu1  ;;  %v2052_v30 = vpack.c.bf16 %v1924_v47, %v1924_v47  ;;  %2244 = vst.msk [vmem:[%s3540_s27 + $0x190] sm:$0xf] %vm2143_vm3, %v2115_v28  ;;  %v1491_v46 = vadd.f32 %v3866_v27, %v1490_v56  ;;  %v2909_v56 = vld [vmem:[%s3391_s18 + $0x3f8] sm:$0xf0] }
 0x1e7   : > { %v1333_v58 = vpop.f32.mrf.mxu0 }
 0x1e8   : > { %2181 = vst.msk [vmem:[%s3540_s27 + $0x94] sm:$0xf] %vm2143_vm3, %v2052_v30  ;;  %v1334_v35 = vadd.f32 %v3866_v27, %v1333_v58  ;;  %v1820_v61 = vadd.f32 %v4002_v6, %v1491_v46  ;;  %v3143_v30 = vld [vmem:[%s3391_s18 + $0x3f4] sm:$0xf]  ;;  %v2648_v46 = vor.u32 %v3077_v23, %v2645_v50  ;;  %v2635_v58 = vld [vmem:[%s3391_s18 + $0x1d0] sm:$0xf] }
 0x1e9   : > { %2977 = vmatmul.msk.bf16.gmra.mxu1 %vm1029_vm2, %v2632_v32  ;;  %3010 = vmatmul.msk.bf16.gmra.mxu3 %vm1029_vm2, %v2896_v43 }
 0x1ea   : > { %v1663_v51 = vadd.f32 %v1662_v11, %v1334_v35  ;;  %1372 = vmatmul.bf16.gmra.mxu0 %v2620_v49  ;;  %v1988_v38 = vmax.f32 %v1820_v61, 0.0  ;;  %1532 = vmatmul.bf16.gmra.mxu2 %v2876_v29  ;;  %v3076_v29 = vld [vmem:[%s3391_s18 + $0x1d4] sm:$0xf0] }
 0x1ec   : > { %v4071_v40 = vpop.f32.mrf.mxu3  ;;  %v1925_v1 = vmax.f32 %v1663_v51, 0.0  ;;  %v2116_v57 = vpack.c.bf16 %v1988_v38, %v1988_v38  ;;  %v2891_v51 = vld [vmem:[%s3391_s18 + $0x3d0] sm:$0xf]  ;;  %v3140_v38 = vld [vmem:[%s3391_s18 + $0x3d4] sm:$0xf0] }
 0x1ed   : > { %v1493_v41 = vpop.f32.mrf.mxu2 }
 0x1ee   : > { %v1669_v60 = vpop.f32.mrf.mxu1  ;;  %v2053_v44 = vpack.c.bf16 %v1925_v1, %v1925_v1  ;;  %2245 = vst.msk [vmem:[%s3540_s27 + $0x194] sm:$0xf] %vm2143_vm3, %v2116_v57  ;;  %v1494_v6 = vadd.f32 %v3866_v27, %v1493_v41  ;;  %v2912_v57 = vor.u32 %v3143_v30, %v2909_v56 }
 0x1ef   : > { %v1335_v8 = vpop.f32.mrf.mxu0 }
 0x1f0   : > { %2182 = vst.msk [vmem:[%s3540_s27 + $0x98] sm:$0xf] %vm2143_vm3, %v2053_v44  ;;  %v1336_v11 = vadd.f32 %v3866_v27, %v1335_v8  ;;  %v1823_v3 = vadd.f32 %v4015_v24, %v1494_v6  ;;  %v2628_v24 = vor.u32 %v3074_v53, %v2627_v26 }
 0x1f2   : > { %v1665_v52 = vadd.f32 %v1664_v21, %v1336_v11  ;;  %v1989_v9 = vmax.f32 %v1823_v3, 0.0  ;;  %v2892_v11 = vor.u32 %v3140_v38, %v2891_v51 }
 0x1f4   : > { %v4086_v59 = vpop.f32.mrf.mxu3  ;;  %v1926_v22 = vmax.f32 %v1665_v52, 0.0  ;;  %v2117_v4 = vpack.c.bf16 %v1989_v9, %v1989_v9 }
 0x1f5   : > { %v1495_v31 = vpop.f32.mrf.mxu2 }
 0x1f6   : > { %v1672_v13 = vpop.f32.mrf.mxu1  ;;  %v2054_v5 = vpack.c.bf16 %v1926_v22, %v1926_v22  ;;  %2246 = vst.msk [vmem:[%s3540_s27 + $0x198] sm:$0xf] %vm2143_vm3, %v2117_v4  ;;  %v1496_v21 = vadd.f32 %v3866_v27, %v1495_v31  ;;  %v2656_v31 = vor.u32 %v3079_v62, %v2653_v25 }
 0x1f7   : > { %v1338_v34 = vpop.f32.mrf.mxu0 }
 0x1f8   : > { %2183 = vst.msk [vmem:[%s3540_s27 + $0x9c] sm:$0xf] %vm2143_vm3, %v2054_v5  ;;  %v1339_v55 = vadd.f32 %v3866_v27, %v1338_v34  ;;  %v1825_v10 = vadd.f32 %v4030_v45, %v1496_v21  ;;  %v3078_v21 = vld [vmem:[%s3391_s18 + $0x1e4] sm:$0xf0] }
 0x1f9   : > { %2978 = vmatmul.msk.bf16.gmra.mxu1 %vm1029_vm2, %v2640_v7  ;;  %3011 = vmatmul.msk.bf16.gmra.mxu3 %vm1029_vm2, %v2904_v19 }
 0x1fa   : > { %v1668_v37 = vadd.f32 %v1667_v39, %v1339_v55  ;;  %1377 = vmatmul.bf16.gmra.mxu0 %v2628_v24  ;;  %v1990_v14 = vmax.f32 %v1825_v10, 0.0  ;;  %1537 = vmatmul.bf16.gmra.mxu2 %v2884_v2  ;;  %v2643_v24 = vld [vmem:[%s3391_s18 + $0x1e0] sm:$0xf]  ;;  %v3142_v10 = vld [vmem:[%s3391_s18 + $0x3e4] sm:$0xf0] }
 0x1fb   : > { %v2899_v55 = vld [vmem:[%s3391_s18 + $0x3e0] sm:$0xf] }
 0x1fc   : > { %v4099_v17 = vpop.f32.mrf.mxu3  ;;  %v1927_v42 = vmax.f32 %v1668_v37, 0.0  ;;  %v2118_v32 = vpack.c.bf16 %v1990_v14, %v1990_v14 }
 0x1fd   : > { %v1498_v16 = vpop.f32.mrf.mxu2 }
 0x1fe   : > { %v1674_v36 = vpop.f32.mrf.mxu1  ;;  %v2055_v0 = vpack.c.bf16 %v1927_v42, %v1927_v42  ;;  %2247 = vst.msk [vmem:[%s3540_s27 + $0x19c] sm:$0xf] %vm2143_vm3, %v2118_v32  ;;  %v1499_v45 = vadd.f32 %v3866_v27, %v1498_v16  ;;  %v2644_v32 = vor.u32 %v3078_v21, %v2643_v24 }
 0x1ff   : > { %v1340_v47 = vpop.f32.mrf.mxu0 }
 0x200   : > { %2184 = vst.msk [vmem:[%s3540_s27 + $0xa0] sm:$0xf] %vm2143_vm3, %v2055_v0  ;;  %v1341_v39 = vadd.f32 %v3866_v27, %v1340_v47  ;;  %v1828_v43 = vadd.f32 %v4043_v63, %v1499_v45  ;;  %v2636_v63 = vor.u32 %v3076_v29, %v2635_v58  ;;  %v3081_v58 = vld [vmem:[%s3391_s18 + $0x204] sm:$0xf]  ;;  %v2661_v29 = vld [vmem:[%s3391_s18 + $0x208] sm:$0xf0] }
 0x202   : > { %v1670_v28 = vadd.f32 %v1669_v60, %v1341_v39  ;;  %v1991_v49 = vmax.f32 %v1828_v43, 0.0 }
 0x204   : > { %v1928_v35 = vmax.f32 %v1670_v28, 0.0  ;;  %v4116_v1 = vpop.f32.mrf.mxu3  ;;  %v2119_v44 = vpack.c.bf16 %v1991_v49, %v1991_v49 }
 0x205   : > { %v1500_v6 = vpop.f32.mrf.mxu2 }
 0x206   : > { %v1677_v61 = vpop.f32.mrf.mxu1  ;;  %v2056_v41 = vpack.c.bf16 %v1928_v35, %v1928_v35  ;;  %2248 = vst.msk [vmem:[%s3540_s27 + $0x1a0] sm:$0xf] %vm2143_vm3, %v2119_v44  ;;  %v1501_v60 = vadd.f32 %v3866_v27, %v1500_v6  ;;  %v2651_v44 = vld [vmem:[%s3391_s18 + $0x1f0] sm:$0xf] }
 0x207   : > { %v1343_v8 = vpop.f32.mrf.mxu0 }
 0x208   : > { %2185 = vst.msk [vmem:[%s3540_s27 + $0xa4] sm:$0xf] %vm2143_vm3, %v2056_v41  ;;  %v1344_v48 = vadd.f32 %v3866_v27, %v1343_v8  ;;  %v1830_v12 = vadd.f32 %v4058_v20, %v1501_v60  ;;  %v3080_v41 = vld [vmem:[%s3391_s18 + $0x1f4] sm:$0xf0]  ;;  %v2907_v60 = vld [vmem:[%s3391_s18 + $0x3f0] sm:$0xf] }
 0x209   : > { %2979 = vmatmul.msk.bf16.gmra.mxu1 %vm1029_vm2, %v2648_v46  ;;  %3012 = vmatmul.msk.bf16.gmra.mxu3 %vm1029_vm2, %v2912_v57  ;;  %v2664_v57 = vor.u32 %v3081_v58, %v2661_v29  ;;  %v3144_v8 = vld [vmem:[%s3391_s18 + $0x3f4] sm:$0xf0] }
 0x20a   : > { %v1673_v3 = vadd.f32 %v1672_v13, %v1344_v48  ;;  %1382 = vmatmul.bf16.gmra.mxu0 %v2636_v63  ;;  %v1992_v52 = vmax.f32 %v1830_v12, 0.0  ;;  %1542 = vmatmul.bf16.gmra.mxu2 %v2892_v11 }
 0x20c   : > { %v1929_v54 = vmax.f32 %v1673_v3, 0.0  ;;  %v2120_v9 = vpack.c.bf16 %v1992_v52, %v1992_v52  ;;  %v4127_v53 = vpop.f32.mrf.mxu3  ;;  %v2652_v3 = vor.u32 %v3080_v41, %v2651_v44 }
 0x20d   : > { %v1503_v26 = vpop.f32.mrf.mxu2 }
 0x20e   : > { %v1679_v18 = vpop.f32.mrf.mxu1  ;;  %v2057_v7 = vpack.c.bf16 %v1929_v54, %v1929_v54  ;;  %2249 = vst.msk [vmem:[%s3540_s27 + $0x1a4] sm:$0xf] %vm2143_vm3, %v2120_v9  ;;  %v1504_v20 = vadd.f32 %v3866_v27, %v1503_v26  ;;  %v2908_v54 = vor.u32 %v3144_v8, %v2907_v60 }
 0x20f   : > { %v1345_v22 = vpop.f32.mrf.mxu0 }
 0x210   : > { %2186 = vst.msk [vmem:[%s3540_s27 + $0xa8] sm:$0xf] %vm2143_vm3, %v2057_v7  ;;  %v1346_v13 = vadd.f32 %v3866_v27, %v1345_v22  ;;  %v1833_v19 = vadd.f32 %v4071_v40, %v1504_v20 }
 0x212   : > { %v1675_v4 = vadd.f32 %v1674_v36, %v1346_v13  ;;  %v1993_v5 = vmax.f32 %v1833_v19, 0.0  ;;  %v2900_v36 = vor.u32 %v3142_v10, %v2899_v55 }
 0x214   : > { %v1930_v34 = vmax.f32 %v1675_v4, 0.0  ;;  %v2121_v37 = vpack.c.bf16 %v1993_v5, %v1993_v5  ;;  %v4149_v45 = vpop.f32.mrf.mxu3 }
 0x215   : > { %v1505_v42 = vpop.f32.mrf.mxu2 }
 0x216   : > { %v1682_v2 = vpop.f32.mrf.mxu1  ;;  %v2058_v14 = vpack.c.bf16 %v1930_v34, %v1930_v34  ;;  %2250 = vst.msk [vmem:[%s3540_s27 + $0x1a8] sm:$0xf] %vm2143_vm3, %v2121_v37  ;;  %v1506_v0 = vadd.f32 %v3866_v27, %v1505_v42 }
 0x217   : > { %v1348_v40 = vpop.f32.mrf.mxu0 }
 0x218   : > { %2187 = vst.msk [vmem:[%s3540_s27 + $0xac] sm:$0xf] %vm2143_vm3, %v2058_v14  ;;  %v1349_v16 = vadd.f32 %v3866_v27, %v1348_v40  ;;  %v1835_v47 = vadd.f32 %v4086_v59, %v1506_v0 }
 0x219   : > { %2980 = vmatmul.msk.bf16.gmra.mxu1 %vm1029_vm2, %v2656_v31 }
 0x21a   : > { %v1678_v39 = vadd.f32 %v1677_v61, %v1349_v16  ;;  %1387 = vmatmul.bf16.gmra.mxu0 %v2644_v32  ;;  %v1994_v23 = vmax.f32 %v1835_v47, 0.0  ;;  %1547 = vmatmul.bf16.gmra.mxu2 %v2900_v36 }
 0x21c   : > { %v1931_v50 = vmax.f32 %v1678_v39, 0.0  ;;  %v2122_v28 = vpack.c.bf16 %v1994_v23, %v1994_v23  ;;  %v4161_v51 = vpop.f32.mrf.mxu3 }
 0x21d   : > { %v1508_v56 = vpop.f32.mrf.mxu2 }
 0x21e   : > { %v1684_v43 = vpop.f32.mrf.mxu1  ;;  %v2059_v30 = vpack.c.bf16 %v1931_v50, %v1931_v50  ;;  %2251 = vst.msk [vmem:[%s3540_s27 + $0x1ac] sm:$0xf] %vm2143_vm3, %v2122_v28  ;;  %v1509_v49 = vadd.f32 %v3866_v27, %v1508_v56 }
 0x21f   : > { %v1350_v46 = vpop.f32.mrf.mxu0 }
 0x220   : > { %2188 = vst.msk [vmem:[%s3540_s27 + $0xb0] sm:$0xf] %vm2143_vm3, %v2059_v30  ;;  %v1351_v59 = vadd.f32 %v3866_v27, %v1350_v46  ;;  %v1838_v35 = vadd.f32 %v4099_v17, %v1509_v49 }
 0x222   : > { %v1680_v61 = vadd.f32 %v1679_v18, %v1351_v59  ;;  %v1995_v38 = vmax.f32 %v1838_v35, 0.0 }
 0x224   : > { %v1932_v6 = vmax.f32 %v1680_v61, 0.0  ;;  %v2123_v11 = vpack.c.bf16 %v1995_v38, %v1995_v38  ;;  %v1849_v13 = vpop.f32.mrf.mxu3 }
 0x225   : > { %v1510_v12 = vpop.f32.mrf.mxu2 }
 0x226   : > { %v1687_v63 = vpop.f32.mrf.mxu1  ;;  %v2060_v48 = vpack.c.bf16 %v1932_v6, %v1932_v6  ;;  %2252 = vst.msk [vmem:[%s3540_s27 + $0x1b0] sm:$0xf] %vm2143_vm3, %v2123_v11  ;;  %v1511_v17 = vadd.f32 %v3866_v27, %v1510_v12 }
 0x227   : > { %v1353_v52 = vpop.f32.mrf.mxu0 }
 0x228   : > { %2189 = vst.msk [vmem:[%s3540_s27 + $0xb4] sm:$0xf] %vm2143_vm3, %v2060_v48  ;;  %v1354_v18 = vadd.f32 %v3866_v27, %v1353_v52  ;;  %v1840_v9 = vadd.f32 %v4116_v1, %v1511_v17 }
 0x229   : > { %2981 = vmatmul.msk.bf16.gmra.mxu1 %vm1029_vm2, %v2664_v57 }
 0x22a   : > { %v1683_v7 = vadd.f32 %v1682_v2, %v1354_v18  ;;  %1392 = vmatmul.bf16.gmra.mxu0 %v2652_v3  ;;  %v1996_v26 = vmax.f32 %v1840_v9, 0.0  ;;  %1552 = vmatmul.bf16.gmra.mxu2 %v2908_v54 }
 0x22c   : > { %v1933_v20 = vmax.f32 %v1683_v7, 0.0  ;;  %v2124_v62 = vpack.c.bf16 %v1996_v26, %v1996_v26  ;;  %v1852_v14 = vpop.f32.mrf.mxu3 }
 0x22d   : > { %v1513_v19 = vpop.f32.mrf.mxu2 }
 0x22e   : > { %v1689_v22 = vpop.f32.mrf.mxu1  ;;  %v2061_v25 = vpack.c.bf16 %v1933_v20, %v1933_v20  ;;  %2253 = vst.msk [vmem:[%s3540_s27 + $0x1b4] sm:$0xf] %vm2143_vm3, %v2124_v62  ;;  %v1514_v4 = vadd.f32 %v3866_v27, %v1513_v19 }
 0x22f   : > { %v1355_v5 = vpop.f32.mrf.mxu0 }
 0x230   : > { %2190 = vst.msk [vmem:[%s3540_s27 + $0xb8] sm:$0xf] %vm2143_vm3, %v2061_v25  ;;  %v1356_v1 = vadd.f32 %v3866_v27, %v1355_v5  ;;  %v1843_v31 = vadd.f32 %v4127_v53, %v1514_v4 }
 0x232   : > { %v1685_v24 = vadd.f32 %v1684_v43, %v1356_v1  ;;  %v1997_v21 = vmax.f32 %v1843_v31, 0.0  ;;  %v4194_v43 = vld [vmem:[%s4320_s2] ss:$0 sm:$0xff] }
 0x234   : > { %v1934_v34 = vmax.f32 %v1685_v24, 0.0  ;;  %v2125_v55 = vpack.c.bf16 %v1997_v21, %v1997_v21  ;;  %v1854_v30 = vpop.f32.mrf.mxu3 }
 0x235   : > { %v1515_v37 = vpop.f32.mrf.mxu2 }
 0x236   : > { %v1692_v2 = vpop.f32.mrf.mxu1  ;;  %v2062_v10 = vpack.c.bf16 %v1934_v34, %v1934_v34  ;;  %2254 = vst.msk [vmem:[%s3540_s27 + $0x1b8] sm:$0xf] %vm2143_vm3, %v2125_v55  ;;  %v1516_v42 = vadd.f32 %v3866_v27, %v1515_v37 }
 0x237   : > { %v1358_v32 = vpop.f32.mrf.mxu0 }
 0x238   : > { %2191 = vst.msk [vmem:[%s3540_s27 + $0xbc] sm:$0xf] %vm2143_vm3, %v2062_v10  ;;  %v1359_v0 = vadd.f32 %v3866_v27, %v1358_v32  ;;  %v1845_v53 = vadd.f32 %v4149_v45, %v1516_v42 }
 0x23a   : > { %v1688_v40 = vadd.f32 %v1687_v63, %v1359_v0  ;;  %v1998_v36 = vmax.f32 %v1845_v53, 0.0 }
 0x23c   : > { %v1935_v16 = vmax.f32 %v1688_v40, 0.0  ;;  %v2126_v39 = vpack.c.bf16 %v1998_v36, %v1998_v36  ;;  %v1857_v6 = vpop.f32.mrf.mxu3 }
 0x23d   : > { %v1518_v50 = vpop.f32.mrf.mxu2 }
 0x23e   : > { %v1694_v47 = vpop.f32.mrf.mxu1  ;;  %v2063_v23 = vpack.c.bf16 %v1935_v16, %v1935_v16  ;;  %2255 = vst.msk [vmem:[%s3540_s27 + $0x1bc] sm:$0xf] %vm2143_vm3, %v2126_v39  ;;  %v1519_v28 = vadd.f32 %v4194_v43, %v1518_v50 }
 0x23f   : > { %v1360_v27 = vpop.f32.mrf.mxu0 }
 0x240   : > { %2192 = vst.msk [vmem:[%s3540_s27 + $0xc0] sm:$0xf] %vm2143_vm3, %v2063_v23  ;;  %v1361_v45 = vadd.f32 %v4194_v43, %v1360_v27  ;;  %v1848_v56 = vadd.f32 %v4161_v51, %v1519_v28 }
 0x242   : > { %v1690_v49 = vadd.f32 %v1689_v22, %v1361_v45  ;;  %v1999_v46 = vmax.f32 %v1848_v56, 0.0 }
 0x244   : > { %v1936_v59 = vmax.f32 %v1690_v49, 0.0  ;;  %v2127_v29 = vpack.c.bf16 %v1999_v46, %v1999_v46  ;;  %v1859_v20 = vpop.f32.mrf.mxu3 }
 0x245   : > { %v1520_v61 = vpop.f32.mrf.mxu2 }
 0x246   : > { %v1697_v58 = vpop.f32.mrf.mxu1  ;;  %v2064_v35 = vpack.c.bf16 %v1936_v59, %v1936_v59  ;;  %2256 = vst.msk [vmem:[%s3540_s27 + $0x1c0] sm:$0xf] %vm2143_vm3, %v2127_v29  ;;  %v1521_v38 = vadd.f32 %v4194_v43, %v1520_v61 }
 0x247   : > { %v1363_v57 = vpop.f32.mrf.mxu0 }
 0x248   : > { %2193 = vst.msk [vmem:[%s3540_s27 + $0xc4] sm:$0xf] %vm2143_vm3, %v2064_v35  ;;  %v1364_v44 = vadd.f32 %v4194_v43, %v1363_v57  ;;  %v1850_v41 = vadd.f32 %v1849_v13, %v1521_v38 }
 0x24a   : > { %v1693_v51 = vadd.f32 %v1692_v2, %v1364_v44  ;;  %v2000_v63 = vmax.f32 %v1850_v41, 0.0 }
 0x24c   : > { %v1937_v60 = vmax.f32 %v1693_v51, 0.0  ;;  %v2128_v11 = vpack.c.bf16 %v2000_v63, %v2000_v63  ;;  %v1862_v10 = vpop.f32.mrf.mxu3 }
 0x24d   : > { %v1523_v12 = vpop.f32.mrf.mxu2 }
 0x24e   : > { %v1699_v8 = vpop.f32.mrf.mxu1  ;;  %v2065_v48 = vpack.c.bf16 %v1937_v60, %v1937_v60  ;;  %2257 = vst.msk [vmem:[%s3540_s27 + $0x1c4] sm:$0xf] %vm2143_vm3, %v2128_v11  ;;  %v1524_v3 = vadd.f32 %v4194_v43, %v1523_v12 }
 0x24f   : > { %v1365_v17 = vpop.f32.mrf.mxu0 }
 0x250   : > { %2194 = vst.msk [vmem:[%s3540_s27 + $0xc8] sm:$0xf] %vm2143_vm3, %v2065_v48  ;;  %v1366_v52 = vadd.f32 %v4194_v43, %v1365_v17  ;;  %v1853_v54 = vadd.f32 %v1852_v14, %v1524_v3 }
 0x252   : > { %v1695_v18 = vadd.f32 %v1694_v47, %v1366_v52  ;;  %v2001_v9 = vmax.f32 %v1853_v54, 0.0 }
 0x254   : > { %v1938_v7 = vmax.f32 %v1695_v18, 0.0  ;;  %v2129_v22 = vpack.c.bf16 %v2001_v9, %v2001_v9  ;;  %v1864_v27 = vpop.f32.mrf.mxu3 }
 0x255   : > { %v1525_v62 = vpop.f32.mrf.mxu2 }
 0x256   : > { %v1702_v26 = vpop.f32.mrf.mxu1  ;;  %v2066_v13 = vpack.c.bf16 %v1938_v7, %v1938_v7  ;;  %2258 = vst.msk [vmem:[%s3540_s27 + $0x1c8] sm:$0xf] %vm2143_vm3, %v2129_v22  ;;  %v1526_v25 = vadd.f32 %v4194_v43, %v1525_v62 }
 0x257   : > { %v1368_v19 = vpop.f32.mrf.mxu0 }
 0x258   : > { %2195 = vst.msk [vmem:[%s3540_s27 + $0xcc] sm:$0xf] %vm2143_vm3, %v2066_v13  ;;  %v1369_v4 = vadd.f32 %v4194_v43, %v1368_v19  ;;  %v1855_v5 = vadd.f32 %v1854_v30, %v1526_v25 }
 0x25a   : > { %v1698_v1 = vadd.f32 %v1697_v58, %v1369_v4  ;;  %v2002_v31 = vmax.f32 %v1855_v5, 0.0 }
 0x25c   : > { %v1939_v24 = vmax.f32 %v1698_v1, 0.0  ;;  %v2130_v34 = vpack.c.bf16 %v2002_v31, %v2002_v31  ;;  %v1867_v41 = vpop.f32.mrf.mxu3 }
 0x25d   : > { %v1528_v55 = vpop.f32.mrf.mxu2 }
 0x25e   : > { %v1704_v21 = vpop.f32.mrf.mxu1  ;;  %v2067_v2 = vpack.c.bf16 %v1939_v24, %v1939_v24  ;;  %2259 = vst.msk [vmem:[%s3540_s27 + $0x1cc] sm:$0xf] %vm2143_vm3, %v2130_v34  ;;  %v1529_v37 = vadd.f32 %v4194_v43, %v1528_v55 }
 0x25f   : > { %v1370_v14 = vpop.f32.mrf.mxu0 }
 0x260   : > { %2196 = vst.msk [vmem:[%s3540_s27 + $0xd0] sm:$0xf] %vm2143_vm3, %v2067_v2  ;;  %v1371_v42 = vadd.f32 %v4194_v43, %v1370_v14  ;;  %v1858_v32 = vadd.f32 %v1857_v6, %v1529_v37 }
 0x262   : > { %v1700_v0 = vadd.f32 %v1699_v8, %v1371_v42  ;;  %v2003_v53 = vmax.f32 %v1858_v32, 0.0 }
 0x264   : > { %v1940_v40 = vmax.f32 %v1700_v0, 0.0  ;;  %v2131_v16 = vpack.c.bf16 %v2003_v53, %v2003_v53  ;;  %v1869_v7 = vpop.f32.mrf.mxu3 }
 0x265   : > { %v1530_v39 = vpop.f32.mrf.mxu2 }
 0x266   : > { %v1707_v36 = vpop.f32.mrf.mxu1  ;;  %v2068_v47 = vpack.c.bf16 %v1940_v40, %v1940_v40  ;;  %2260 = vst.msk [vmem:[%s3540_s27 + $0x1d0] sm:$0xf] %vm2143_vm3, %v2131_v16  ;;  %v1531_v23 = vadd.f32 %v4194_v43, %v1530_v39 }
 0x267   : > { %v1373_v50 = vpop.f32.mrf.mxu0 }
 0x268   : > { %2197 = vst.msk [vmem:[%s3540_s27 + $0xd4] sm:$0xf] %vm2143_vm3, %v2068_v47  ;;  %v1374_v28 = vadd.f32 %v4194_v43, %v1373_v50  ;;  %v1860_v45 = vadd.f32 %v1859_v20, %v1531_v23 }
 0x26a   : > { %v1703_v30 = vadd.f32 %v1702_v26, %v1374_v28  ;;  %v2004_v56 = vmax.f32 %v1860_v45, 0.0 }
 0x26c   : > { %v1941_v49 = vmax.f32 %v1703_v30, 0.0  ;;  %v2132_v59 = vpack.c.bf16 %v2004_v56, %v2004_v56  ;;  %v1872_v2 = vpop.f32.mrf.mxu3 }
 0x26d   : > { %v1533_v29 = vpop.f32.mrf.mxu2 }
 0x26e   : > { %v1709_v46 = vpop.f32.mrf.mxu1  ;;  %v2069_v58 = vpack.c.bf16 %v1941_v49, %v1941_v49  ;;  %2261 = vst.msk [vmem:[%s3540_s27 + $0x1d4] sm:$0xf] %vm2143_vm3, %v2132_v59  ;;  %v1534_v35 = vadd.f32 %v4194_v43, %v1533_v29 }
 0x26f   : > { %v1375_v61 = vpop.f32.mrf.mxu0 }
 0x270   : > { %2198 = vst.msk [vmem:[%s3540_s27 + $0xd8] sm:$0xf] %vm2143_vm3, %v2069_v58  ;;  %v1376_v38 = vadd.f32 %v4194_v43, %v1375_v61  ;;  %v1863_v57 = vadd.f32 %v1862_v10, %v1534_v35 }
 0x272   : > { %v1705_v44 = vadd.f32 %v1704_v21, %v1376_v38  ;;  %v2005_v51 = vmax.f32 %v1863_v57, 0.0 }
 0x274   : > { %v1942_v6 = vmax.f32 %v1705_v44, 0.0  ;;  %v2133_v60 = vpack.c.bf16 %v2005_v51, %v2005_v51  ;;  %v1874_v50 = vpop.f32.mrf.mxu3 }
 0x275   : > { %v1535_v11 = vpop.f32.mrf.mxu2 }
 0x276   : > { %v1712_v63 = vpop.f32.mrf.mxu1  ;;  %v2070_v8 = vpack.c.bf16 %v1942_v6, %v1942_v6  ;;  %2262 = vst.msk [vmem:[%s3540_s27 + $0x1d8] sm:$0xf] %vm2143_vm3, %v2133_v60  ;;  %v1536_v48 = vadd.f32 %v4194_v43, %v1535_v11 }
 0x277   : > { %v1378_v12 = vpop.f32.mrf.mxu0 }
 0x278   : > { %2199 = vst.msk [vmem:[%s3540_s27 + $0xdc] sm:$0xf] %vm2143_vm3, %v2070_v8  ;;  %v1379_v3 = vadd.f32 %v4194_v43, %v1378_v12  ;;  %v1865_v17 = vadd.f32 %v1864_v27, %v1536_v48 }
 0x27a   : > { %v1708_v52 = vadd.f32 %v1707_v36, %v1379_v3  ;;  %v2006_v54 = vmax.f32 %v1865_v17, 0.0  ;;  %v1399_v17 = vadd.f32 %v4194_v43, %v3542_v15 }
 0x27c   : > { %v1943_v18 = vmax.f32 %v1708_v52, 0.0  ;;  %v2134_v26 = vpack.c.bf16 %v2006_v54, %v2006_v54  ;;  %v1877_v57 = vpop.f32.mrf.mxu3 }
 0x27d   : > { %v1538_v22 = vpop.f32.mrf.mxu2 }
 0x27e   : > { %v1714_v9 = vpop.f32.mrf.mxu1  ;;  %v2071_v20 = vpack.c.bf16 %v1943_v18, %v1943_v18  ;;  %2263 = vst.msk [vmem:[%s3540_s27 + $0x1dc] sm:$0xf] %vm2143_vm3, %v2134_v26  ;;  %v1539_v13 = vadd.f32 %v4194_v43, %v1538_v22 }
 0x27f   : > { %v1380_v62 = vpop.f32.mrf.mxu0 }
 0x280   : > { %2200 = vst.msk [vmem:[%s3540_s27 + $0xe0] sm:$0xf] %vm2143_vm3, %v2071_v20  ;;  %v1381_v25 = vadd.f32 %v4194_v43, %v1380_v62  ;;  %v1868_v19 = vadd.f32 %v1867_v41, %v1539_v13 }
 0x282   : > { %v1710_v4 = vadd.f32 %v1709_v46, %v1381_v25  ;;  %v2007_v5 = vmax.f32 %v1868_v19, 0.0 }
 0x284   : > { %v1944_v1 = vmax.f32 %v1710_v4, 0.0  ;;  %v2135_v24 = vpack.c.bf16 %v2007_v5, %v2007_v5  ;;  %v1879_v18 = vpop.f32.mrf.mxu3 }
 0x285   : > { %v1540_v34 = vpop.f32.mrf.mxu2 }
 0x286   : > { %v1717_v31 = vpop.f32.mrf.mxu1  ;;  %v2072_v21 = vpack.c.bf16 %v1944_v1, %v1944_v1  ;;  %2264 = vst.msk [vmem:[%s3540_s27 + $0x1e0] sm:$0xf] %vm2143_vm3, %v2135_v24  ;;  %v1541_v55 = vadd.f32 %v4194_v43, %v1540_v34  ;;  %v1401_v1 = vadd.f32 %v4194_v43, %v3557_v33 }
 0x287   : > { %v1383_v10 = vpop.f32.mrf.mxu0 }
 0x288   : > { %2201 = vst.msk [vmem:[%s3540_s27 + $0xe4] sm:$0xf] %vm2143_vm3, %v2072_v21  ;;  %v1384_v37 = vadd.f32 %v4194_v43, %v1383_v10  ;;  %v1870_v14 = vadd.f32 %v1869_v7, %v1541_v55 }
 0x28a   : > { %v1713_v42 = vadd.f32 %v1712_v63, %v1384_v37  ;;  %v2008_v32 = vmax.f32 %v1870_v14, 0.0 }
 0x28c   : > { %v1945_v0 = vmax.f32 %v1713_v42, 0.0  ;;  %v2136_v40 = vpack.c.bf16 %v2008_v32, %v2008_v32  ;;  %v1882_v10 = vpop.f32.mrf.mxu3 }
 0x28d   : > { %v1543_v16 = vpop.f32.mrf.mxu2 }
 0x28e   : > { %v1719_v53 = vpop.f32.mrf.mxu1  ;;  %v2073_v36 = vpack.c.bf16 %v1945_v0, %v1945_v0  ;;  %2265 = vst.msk [vmem:[%s3540_s27 + $0x1e4] sm:$0xf] %vm2143_vm3, %v2136_v40  ;;  %v1544_v47 = vadd.f32 %v4194_v43, %v1543_v16 }
 0x28f   : > { %v1385_v39 = vpop.f32.mrf.mxu0 }
 0x290   : > { %2202 = vst.msk [vmem:[%s3540_s27 + $0xe8] sm:$0xf] %vm2143_vm3, %v2073_v36  ;;  %v1386_v23 = vadd.f32 %v4194_v43, %v1385_v39  ;;  %v1873_v28 = vadd.f32 %v1872_v2, %v1544_v47 }
 0x292   : > { %v1715_v27 = vadd.f32 %v1714_v9, %v1386_v23  ;;  %v2009_v45 = vmax.f32 %v1873_v28, 0.0 }
 0x294   : > { %v1946_v30 = vmax.f32 %v1715_v27, 0.0  ;;  %v2137_v49 = vpack.c.bf16 %v2009_v45, %v2009_v45  ;;  %v1884_v28 = vpop.f32.mrf.mxu3 }
 0x295   : > { %v1545_v59 = vpop.f32.mrf.mxu2 }
 0x296   : > { %v1722_v56 = vpop.f32.mrf.mxu1  ;;  %v2074_v46 = vpack.c.bf16 %v1946_v30, %v1946_v30  ;;  %2266 = vst.msk [vmem:[%s3540_s27 + $0x1e8] sm:$0xf] %vm2143_vm3, %v2137_v49  ;;  %v1546_v58 = vadd.f32 %v4194_v43, %v1545_v59 }
 0x297   : > { %v1388_v29 = vpop.f32.mrf.mxu0 }
 0x298   : > { %2203 = vst.msk [vmem:[%s3540_s27 + $0xec] sm:$0xf] %vm2143_vm3, %v2074_v46  ;;  %v1389_v35 = vadd.f32 %v4194_v43, %v1388_v29  ;;  %v1875_v61 = vadd.f32 %v1874_v50, %v1546_v58 }
 0x29a   : > { %v1718_v38 = vadd.f32 %v1717_v31, %v1389_v35  ;;  %v2010_v44 = vmax.f32 %v1875_v61, 0.0 }
 0x29c   : > { %v1947_v41 = vmax.f32 %v1718_v38, 0.0  ;;  %v2138_v6 = vpack.c.bf16 %v2010_v44, %v2010_v44 }
 0x29d   : > { %v1548_v60 = vpop.f32.mrf.mxu2 }
 0x29e   : > { %v1724_v51 = vpop.f32.mrf.mxu1  ;;  %v2075_v63 = vpack.c.bf16 %v1947_v41, %v1947_v41  ;;  %2267 = vst.msk [vmem:[%s3540_s27 + $0x1ec] sm:$0xf] %vm2143_vm3, %v2138_v6  ;;  %v1549_v8 = vadd.f32 %v4194_v43, %v1548_v60 }
 0x29f   : > { %v1390_v11 = vpop.f32.mrf.mxu0 }
 0x2a0   : > { %2204 = vst.msk [vmem:[%s3540_s27 + $0xf0] sm:$0xf] %vm2143_vm3, %v2075_v63  ;;  %v1391_v48 = vadd.f32 %v4194_v43, %v1390_v11  ;;  %v1878_v12 = vadd.f32 %v1877_v57, %v1549_v8 }
 0x2a2   : > { %v1720_v3 = vadd.f32 %v1719_v53, %v1391_v48  ;;  %v2011_v52 = vmax.f32 %v1878_v12, 0.0 }
 0x2a4   : > { %v1948_v54 = vmax.f32 %v1720_v3, 0.0  ;;  %v2139_v7 = vpack.c.bf16 %v2011_v52, %v2011_v52 }
 0x2a5   : > { %v1550_v22 = vpop.f32.mrf.mxu2 }
 0x2a6   : > { %v1727_v9 = vpop.f32.mrf.mxu1  ;;  %v2076_v20 = vpack.c.bf16 %v1948_v54, %v1948_v54  ;;  %2268 = vst.msk [vmem:[%s3540_s27 + $0x1f0] sm:$0xf] %vm2143_vm3, %v2139_v7  ;;  %v1551_v62 = vadd.f32 %v4194_v43, %v1550_v22 }
 0x2a7   : > { %v1728_v26 = vadd.f32 %v1727_v9, %v1399_v17  ;;  %v1393_v25 = vpop.f32.mrf.mxu0 }
 0x2a8   : > { %2205 = vst.msk [vmem:[%s3540_s27 + $0xf4] sm:$0xf] %vm2143_vm3, %v2076_v20  ;;  %v1394_v15 = vadd.f32 %v4194_v43, %v1393_v25  ;;  %v1880_v4 = vadd.f32 %v1879_v18, %v1551_v62 }
 0x2a9   : > { %v1951_v13 = vmax.f32 %v1728_v26, 0.0 }
 0x2aa   : > { %v1723_v5 = vadd.f32 %v1722_v56, %v1394_v15  ;;  %v2012_v31 = vmax.f32 %v1880_v4, 0.0 }
 0x2ab   : > { %v2079_v19 = vpack.c.bf16 %v1951_v13, %v1951_v13 }
 0x2ac   : > { %v1949_v24 = vmax.f32 %v1723_v5, 0.0  ;;  %v2140_v34 = vpack.c.bf16 %v2012_v31, %v2012_v31 }
 0x2ad   : > { %2208 = vst.msk [vmem:[%s3540_s27 + $0x100] sm:$0xf] %vm2143_vm3, %v2079_v19  ;;  %v1553_v37 = vpop.f32.mrf.mxu2 }
 0x2ae   : > { %v1729_v21 = vpop.f32.mrf.mxu1  ;;  %v2077_v55 = vpack.c.bf16 %v1949_v24, %v1949_v24  ;;  %2269 = vst.msk [vmem:[%s3540_s27 + $0x1f4] sm:$0xf] %vm2143_vm3, %v2140_v34  ;;  %v1554_v42 = vadd.f32 %v4194_v43, %v1553_v37 }
 0x2af   : > { %v1730_v2 = vadd.f32 %v1729_v21, %v1401_v1  ;;  %v1395_v32 = vpop.f32.mrf.mxu0 }
 0x2b0   : > { %2206 = vst.msk [vmem:[%s3540_s27 + $0xf8] sm:$0xf] %vm2143_vm3, %v2077_v55  ;;  %v1396_v33 = vadd.f32 %v4194_v43, %v1395_v32  ;;  %v1883_v53 = vadd.f32 %v1882_v10, %v1554_v42 }
 0x2b1   : > { %v1952_v14 = vmax.f32 %v1730_v2, 0.0 }
 0x2b2   : > { %v1725_v40 = vadd.f32 %v1724_v51, %v1396_v33  ;;  %v2013_v36 = vmax.f32 %v1883_v53, 0.0 }
 0x2b3   : > { %v2080_v0 = vpack.c.bf16 %v1952_v14, %v1952_v14 }
 0x2b4   : > { %v1950_v16 = vmax.f32 %v1725_v40, 0.0  ;;  %v2141_v47 = vpack.c.bf16 %v2013_v36, %v2013_v36 }
 0x2b5   : > { %2209 = vst.msk [vmem:[%s3540_s27 + $0x104] sm:$0xf] %vm2143_vm3, %v2080_v0  ;;  %v1555_v23 = vpop.f32.mrf.mxu2 }
 0x2b6   : > { %v2078_v39 = vpack.c.bf16 %v1950_v16, %v1950_v16  ;;  %2270 = vst.msk [vmem:[%s3540_s27 + $0x1f8] sm:$0xf] %vm2143_vm3, %v2141_v47  ;;  %v1556_v50 = vadd.f32 %v4194_v43, %v1555_v23 }
 0x2b8   : > { %2207 = vst.msk [vmem:[%s3540_s27 + $0xfc] sm:$0xf] %vm2143_vm3, %v2078_v39  ;;  %v1885_v27 = vadd.f32 %v1884_v28, %v1556_v50 }
 0x2ba   : > { %v2014_v45 = vmax.f32 %v1885_v27, 0.0 }
 0x2bc   : > { %v2142_v30 = vpack.c.bf16 %v2014_v45, %v2014_v45 }
 0x2be   : > { %2271 = vst.msk [vmem:[%s3540_s27 + $0x1fc] sm:$0xf] %vm2143_vm3, %v2142_v30 }
 0x2bf PF: > { %s16_s17 = sadd.s32 1, %s3305_s17   ;;  %s4324_s12 = smov %s3289_s13 }
 0x2c0   : > { %p13_p0 = scmp.ge.s32.totalorder %s16_s17, 4   ;;  %s4325_s13 = smov %s3293_s14 }
 0x2c1   : > { %s4326_s14 = smov %s3379_s24  ;;  %s4327_s15 = smov %s3301_s16 }
 0x2c2   : > { %s4328_s16 = smov %s4330_s19  ;;  %15 = sbr.rel (!%p13_p0) target bundleno = 4 (0x4), region = 78 }
 0x2c7   :  { %2299 = vsyncpa [#allocation3], 1 }
 0x2c8   :  { %2301 = vsyncpa [#allocation3 + $0x1], 1 }

</bundles_post_ra>
